<compile_context>
chip_gen: v7x
topology: tpu7x:2x2x1
jax: 0.10.0
libtpu: 0.0.40
codegen_flags: <defaults>
</compile_context>

<pallas_src>
import functools
import math

import jax
import jax.numpy as jnp
from jax.experimental import pallas as pl
from jax.experimental.pallas import tpu as pltpu


# ----------------------------------------------------------------------------
# Fused Pallas kernel: all LSTM layers + final Linear in one call
# ----------------------------------------------------------------------------
def _fused_lstm_linear_kernel(x_ref, *refs, T, B, H, num_layers):
    """Fused multi-layer LSTM + Linear on the last timestep.

    x_ref : (T*B, D_in) VMEM -- time-major input, flattened over (T, B).
    refs  : per layer (wih (D_in,4H), whh (H,4H), b (1,4H)),
            then wlin (H,O), blin (1,O), then out_ref (B,O).
    Gate columns of wih/whh/b are pre-permuted to [i, f, o, g].
    """
    layer_refs = refs[:3 * num_layers]
    wlin_ref = refs[3 * num_layers]
    blin_ref = refs[3 * num_layers + 1]
    out_ref = refs[3 * num_layers + 2]

    xin = x_ref[...]                                  # (T*B, D_in)
    h = None
    for l in range(num_layers):
        wih = layer_refs[3 * l][...]                  # (D_in, 4H)
        whh = layer_refs[3 * l + 1][...]              # (H, 4H)
        b = layer_refs[3 * l + 2][...]                # (1, 4H)

        # Hoisted input projection for ALL timesteps (bias folded in, one matmul).
        proj = jnp.dot(xin, wih, preferred_element_type=jnp.float32) + b  # (T*B, 4H)

        last_layer = (l == num_layers - 1)
        h = jnp.zeros((B, H), jnp.float32)
        c = jnp.zeros((B, H), jnp.float32)
        hs = []
        # Fully unrolled time loop (T is small & static); h/c stay in registers.
        for t in range(T):
            gates = proj[t * B:(t + 1) * B, :] + jnp.dot(
                h, whh, preferred_element_type=jnp.float32)      # (B, 4H)
            # Columns are [i, f, o, g]: one sigmoid over 3H, one tanh over H.
            sig = jax.nn.sigmoid(gates[:, :3 * H])
            i_g = sig[:, 0 * H:1 * H]
            f_g = sig[:, 1 * H:2 * H]
            o_g = sig[:, 2 * H:3 * H]
            g_g = jnp.tanh(gates[:, 3 * H:])
            c = f_g * c + i_g * g_g
            h = o_g * jnp.tanh(c)
            if not last_layer:
                hs.append(h)
        if not last_layer:
            # Sequence handed to the next layer stays on-chip as a value.
            xin = jnp.concatenate(hs, axis=0)                    # (T*B, H)

    # Final Linear on the last timestep of the last layer (fused, single store).
    out_ref[...] = (
        jnp.dot(h, wlin_ref[...], preferred_element_type=jnp.float32)
        + blin_ref[...]
    )


def _full_spec(shape):
    zeros = (0,) * len(shape)
    return pl.BlockSpec(shape, lambda i, _z=zeros: _z)


# ----------------------------------------------------------------------------
# Wrapper
# ----------------------------------------------------------------------------
@jax.jit
def lstm_model_forward(x, prep):
    """Forward pass equivalent to LSTM_model.forward.

    x    : (B, T, input_size) batch-first (PyTorch convention), float32.
    prep : output of prepare_params() (kernel-layout weights).
    Returns: (B, output_size).
    """
    B, T, D = x.shape
    layers = prep["layers"]
    num_layers = len(layers)
    H = layers[0]["whh"].shape[0]
    O = prep["wlin"].shape[1]

    # Time-major + flatten (T, B) once, outside the kernel.
    x_flat = jnp.transpose(x, (1, 0, 2)).reshape(T * B, D)

    flat_args = [x_flat]
    in_specs = [_full_spec((T * B, D))]
    for lp in layers:
        for name in ("wih", "whh", "b"):
            a = lp[name]
            flat_args.append(a)
            in_specs.append(_full_spec(a.shape))
    flat_args += [prep["wlin"], prep["blin"]]
    in_specs += [_full_spec(prep["wlin"].shape), _full_spec(prep["blin"].shape)]

    kernel = functools.partial(
        _fused_lstm_linear_kernel, T=T, B=B, H=H, num_layers=num_layers)

    # TODO(synk): dropout > 0 between LSTM layers is not implemented (module
    # default dropout=0, so it is a no-op for this configuration).
    # NOTE: for long sequences on v7x, chunk the time axis (grid over T) instead
    # of holding the whole (T*B, *) projection resident; unnecessary at T=8.
    return pl.pallas_call(
        kernel,
        out_shape=jax.ShapeDtypeStruct((B, O), jnp.float32),
        grid=(1,),
        in_specs=in_specs,
        out_specs=_full_spec((B, O)),
        compiler_params=pltpu.CompilerParams(
            dimension_semantics=("arbitrary",)),
    )(*flat_args)


# ----------------------------------------------------------------------------
# Parameter init (PyTorch layout) + one-time kernel-layout preparation
# ----------------------------------------------------------------------------
def init_params(key, input_size, hidden_size, num_layers, output_size):
    """PyTorch-layout params: w_ih (4H, D), w_hh (4H, H), gate order [i,f,g,o]."""
    k = 1.0 / math.sqrt(hidden_size)
    params = {"lstm": [], "linear": {}}
    for l in range(num_layers):
        d_in = input_size if l == 0 else hidden_size
        key, k1, k2, k3, k4 = jax.random.split(key, 5)
        params["lstm"].append({
            "w_ih": jax.random.uniform(k1, (4 * hidden_size, d_in), jnp.float32, -k, k),
            "w_hh": jax.random.uniform(k2, (4 * hidden_size, hidden_size), jnp.float32, -k, k),
            "b_ih": jax.random.uniform(k3, (4 * hidden_size,), jnp.float32, -k, k),
            "b_hh": jax.random.uniform(k4, (4 * hidden_size,), jnp.float32, -k, k),
        })
    key, k1, k2 = jax.random.split(key, 3)
    params["linear"]["w"] = jax.random.uniform(
        k1, (output_size, hidden_size), jnp.float32, -k, k)
    params["linear"]["b"] = jax.random.uniform(
        k2, (output_size,), jnp.float32, -k, k)
    return params


def prepare_params(params):
    """One-time layout prep: transpose weights, fuse biases, permute gate
    columns from PyTorch's [i, f, g, o] to [i, f, o, g]."""
    H = params["lstm"][0]["w_hh"].shape[1]

    def permute_ifog(w_t):  # (..., 4H) cols [i,f,g,o] -> [i,f,o,g]
        i = w_t[..., 0 * H:1 * H]
        f = w_t[..., 1 * H:2 * H]
        g = w_t[..., 2 * H:3 * H]
        o = w_t[..., 3 * H:4 * H]
        return jnp.concatenate([i, f, o, g], axis=-1)

    layers = []
    for lp in params["lstm"]:
        layers.append({
            "wih": permute_ifog(lp["w_ih"].T),                        # (D_in, 4H)
            "whh": permute_ifog(lp["w_hh"].T),                        # (H, 4H)
            "b": permute_ifog((lp["b_ih"] + lp["b_hh"]).reshape(1, 4 * H)),
        })
    return {
        "layers": layers,
        "wlin": params["linear"]["w"].T,                              # (H, O)
        "blin": params["linear"]["b"].reshape(1, -1),                 # (1, O)
    }


# ----------------------------------------------------------------------------
# Pure-JAX reference (PyTorch semantics) for verification
# ----------------------------------------------------------------------------
def reference_forward(x, params, num_layers):
    B, T, _ = x.shape
    h_seq = x
    for l in range(num_layers):
        lp = params["lstm"][l]
        H = lp["w_hh"].shape[1]
        h = jnp.zeros((B, H), jnp.float32)
        c = jnp.zeros((B, H), jnp.float32)
        outs = []
        for t in range(T):
            gates = (h_seq[:, t, :] @ lp["w_ih"].T + h @ lp["w_hh"].T
                     + lp["b_ih"] + lp["b_hh"])
            i = jax.nn.sigmoid(gates[:, 0 * H:1 * H])
            f = jax.nn.sigmoid(gates[:, 1 * H:2 * H])
            g = jnp.tanh(gates[:, 2 * H:3 * H])
            o = jax.nn.sigmoid(gates[:, 3 * H:4 * H])
            c = f * c + i * g
            h = o * jnp.tanh(c)
            outs.append(h)
        h_seq = jnp.stack(outs, axis=1)
    return h_seq[:, -1, :] @ params["linear"]["w"].T + params["linear"]["b"]


# ----------------------------------------------------------------------------
if __name__ == "__main__":
    input_size = 16
    hidden_size = 32
    num_layers = 2
    output_size = 4
    batch = 2
    seq = 8

    root = jax.random.PRNGKey(0)
    pkey, xkey = jax.random.split(root)
    params = init_params(pkey, input_size, hidden_size, num_layers, output_size)
    prep = prepare_params(params)
    x = jax.random.normal(xkey, (batch, seq, input_size), jnp.float32)

    out = lstm_model_forward(x, prep)
    out = jax.block_until_ready(out)

    ref = reference_forward(x, params, num_layers)
    assert out.shape == (batch, output_size)
    assert jnp.allclose(out, ref, atol=1e-5, rtol=1e-5), (out, ref)

    print("KERNEL_OK")
</pallas_src>

<mosaic_0001>
module attributes {stable_mosaic.version = 11 : i64} {
  func.func @_fused_lstm_linear_kernel(%arg0: i32, %arg1: memref<16x16xf32, #tpu.memory_space<vmem>>, %arg2: memref<16x128xf32, #tpu.memory_space<vmem>>, %arg3: memref<32x128xf32, #tpu.memory_space<vmem>>, %arg4: memref<1x128xf32, #tpu.memory_space<vmem>>, %arg5: memref<32x128xf32, #tpu.memory_space<vmem>>, %arg6: memref<32x128xf32, #tpu.memory_space<vmem>>, %arg7: memref<1x128xf32, #tpu.memory_space<vmem>>, %arg8: memref<32x4xf32, #tpu.memory_space<vmem>>, %arg9: memref<1x4xf32, #tpu.memory_space<vmem>>, %arg10: memref<2x4xf32, #tpu.memory_space<vmem>>) attributes {dimension_semantics = [#tpu.dimension_semantics<arbitrary>], iteration_bounds = array<i64: 1>, scalar_prefetch = 0 : i64, scratch_operands = 0 : i64, tpu.core_type = #tpu.core_type<tc>, window_params = [{pipeline_mode = #tpu.pipeline_mode<synchronous>, transform_indices = @transform_0, window_bounds = array<i64: 16, 16>}, {pipeline_mode = #tpu.pipeline_mode<synchronous>, transform_indices = @transform_1, window_bounds = array<i64: 16, 128>}, {pipeline_mode = #tpu.pipeline_mode<synchronous>, transform_indices = @transform_2, window_bounds = array<i64: 32, 128>}, {pipeline_mode = #tpu.pipeline_mode<synchronous>, transform_indices = @transform_3, window_bounds = array<i64: 1, 128>}, {pipeline_mode = #tpu.pipeline_mode<synchronous>, transform_indices = @transform_4, window_bounds = array<i64: 32, 128>}, {pipeline_mode = #tpu.pipeline_mode<synchronous>, transform_indices = @transform_5, window_bounds = array<i64: 32, 128>}, {pipeline_mode = #tpu.pipeline_mode<synchronous>, transform_indices = @transform_6, window_bounds = array<i64: 1, 128>}, {pipeline_mode = #tpu.pipeline_mode<synchronous>, transform_indices = @transform_7, window_bounds = array<i64: 32, 4>}, {pipeline_mode = #tpu.pipeline_mode<synchronous>, transform_indices = @transform_8, window_bounds = array<i64: 1, 4>}, {pipeline_mode = #tpu.pipeline_mode<synchronous>, transform_indices = @transform_9, window_bounds = array<i64: 2, 4>}]} {
    %c0 = arith.constant 0 : index
    %c0_0 = arith.constant 0 : index
    %0 = vector.load %arg1[%c0, %c0_0] : memref<16x16xf32, #tpu.memory_space<vmem>>, vector<16x16xf32>
    %c0_1 = arith.constant 0 : index
    %c0_2 = arith.constant 0 : index
    %1 = vector.load %arg2[%c0_1, %c0_2] : memref<16x128xf32, #tpu.memory_space<vmem>>, vector<16x128xf32>
    %c0_3 = arith.constant 0 : index
    %c0_4 = arith.constant 0 : index
    %2 = vector.load %arg3[%c0_3, %c0_4] : memref<32x128xf32, #tpu.memory_space<vmem>>, vector<32x128xf32>
    %c0_5 = arith.constant 0 : index
    %c0_6 = arith.constant 0 : index
    %3 = vector.load %arg4[%c0_5, %c0_6] : memref<1x128xf32, #tpu.memory_space<vmem>>, vector<1x128xf32>
    %cst = arith.constant dense<0.000000e+00> : vector<16x128xf32>
    %4 = tpu.matmul %0, %1, %cst {dimension_numbers = #tpu.dot_dimension_numbers<[1], [0], [0], [1], [0, 0, 1, 1], [], []>} : vector<16x16xf32>, vector<16x128xf32>, vector<16x128xf32> -> vector<16x128xf32>
    %5 = vector.broadcast %3 : vector<1x128xf32> to vector<16x128xf32>
    %6 = arith.addf %4, %5 : vector<16x128xf32>
    %cst_7 = arith.constant 0.000000e+00 : f32
    %7 = vector.broadcast %cst_7 : f32 to vector<2x32xf32>
    %cst_8 = arith.constant 0.000000e+00 : f32
    %8 = vector.broadcast %cst_8 : f32 to vector<2x32xf32>
    %9 = vector.extract_strided_slice %6 {offsets = [0, 0], sizes = [2, 128], strides = [1, 1]} : vector<16x128xf32> to vector<2x128xf32>
    %cst_9 = arith.constant dense<0.000000e+00> : vector<2x128xf32>
    %10 = tpu.matmul %7, %2, %cst_9 {dimension_numbers = #tpu.dot_dimension_numbers<[1], [0], [0], [1], [0, 0, 1, 1], [], []>} : vector<2x32xf32>, vector<32x128xf32>, vector<2x128xf32> -> vector<2x128xf32>
    %11 = arith.addf %9, %10 : vector<2x128xf32>
    %12 = vector.extract_strided_slice %11 {offsets = [0, 0], sizes = [2, 96], strides = [1, 1]} : vector<2x128xf32> to vector<2x96xf32>
    %13 = arith.negf %12 : vector<2x96xf32>
    %14 = math.exp %13 : vector<2x96xf32>
    %cst_10 = arith.constant 1.000000e+00 : f32
    %15 = vector.broadcast %cst_10 : f32 to vector<2x96xf32>
    %16 = arith.addf %15, %14 : vector<2x96xf32>
    %17 = arith.divf %15, %16 : vector<2x96xf32>
    %18 = vector.extract_strided_slice %17 {offsets = [0, 0], sizes = [2, 32], strides = [1, 1]} : vector<2x96xf32> to vector<2x32xf32>
    %19 = vector.extract_strided_slice %17 {offsets = [0, 32], sizes = [2, 32], strides = [1, 1]} : vector<2x96xf32> to vector<2x32xf32>
    %20 = vector.extract_strided_slice %17 {offsets = [0, 64], sizes = [2, 32], strides = [1, 1]} : vector<2x96xf32> to vector<2x32xf32>
    %21 = vector.extract_strided_slice %11 {offsets = [0, 96], sizes = [2, 32], strides = [1, 1]} : vector<2x128xf32> to vector<2x32xf32>
    %22 = math.tanh %21 : vector<2x32xf32>
    %23 = arith.mulf %19, %8 : vector<2x32xf32>
    %24 = arith.mulf %18, %22 : vector<2x32xf32>
    %25 = arith.addf %23, %24 : vector<2x32xf32>
    %26 = math.tanh %25 : vector<2x32xf32>
    %27 = arith.mulf %20, %26 : vector<2x32xf32>
    %28 = vector.extract_strided_slice %6 {offsets = [2, 0], sizes = [2, 128], strides = [1, 1]} : vector<16x128xf32> to vector<2x128xf32>
    %cst_11 = arith.constant dense<0.000000e+00> : vector<2x128xf32>
    %29 = tpu.matmul %27, %2, %cst_11 {dimension_numbers = #tpu.dot_dimension_numbers<[1], [0], [0], [1], [0, 0, 1, 1], [], []>} : vector<2x32xf32>, vector<32x128xf32>, vector<2x128xf32> -> vector<2x128xf32>
    %30 = arith.addf %28, %29 : vector<2x128xf32>
    %31 = vector.extract_strided_slice %30 {offsets = [0, 0], sizes = [2, 96], strides = [1, 1]} : vector<2x128xf32> to vector<2x96xf32>
    %32 = arith.negf %31 : vector<2x96xf32>
    %33 = math.exp %32 : vector<2x96xf32>
    %cst_12 = arith.constant 1.000000e+00 : f32
    %34 = vector.broadcast %cst_12 : f32 to vector<2x96xf32>
    %35 = arith.addf %34, %33 : vector<2x96xf32>
    %36 = arith.divf %34, %35 : vector<2x96xf32>
    %37 = vector.extract_strided_slice %36 {offsets = [0, 0], sizes = [2, 32], strides = [1, 1]} : vector<2x96xf32> to vector<2x32xf32>
    %38 = vector.extract_strided_slice %36 {offsets = [0, 32], sizes = [2, 32], strides = [1, 1]} : vector<2x96xf32> to vector<2x32xf32>
    %39 = vector.extract_strided_slice %36 {offsets = [0, 64], sizes = [2, 32], strides = [1, 1]} : vector<2x96xf32> to vector<2x32xf32>
    %40 = vector.extract_strided_slice %30 {offsets = [0, 96], sizes = [2, 32], strides = [1, 1]} : vector<2x128xf32> to vector<2x32xf32>
    %41 = math.tanh %40 : vector<2x32xf32>
    %42 = arith.mulf %38, %25 : vector<2x32xf32>
    %43 = arith.mulf %37, %41 : vector<2x32xf32>
    %44 = arith.addf %42, %43 : vector<2x32xf32>
    %45 = math.tanh %44 : vector<2x32xf32>
    %46 = arith.mulf %39, %45 : vector<2x32xf32>
    %47 = vector.extract_strided_slice %6 {offsets = [4, 0], sizes = [2, 128], strides = [1, 1]} : vector<16x128xf32> to vector<2x128xf32>
    %cst_13 = arith.constant dense<0.000000e+00> : vector<2x128xf32>
    %48 = tpu.matmul %46, %2, %cst_13 {dimension_numbers = #tpu.dot_dimension_numbers<[1], [0], [0], [1], [0, 0, 1, 1], [], []>} : vector<2x32xf32>, vector<32x128xf32>, vector<2x128xf32> -> vector<2x128xf32>
    %49 = arith.addf %47, %48 : vector<2x128xf32>
    %50 = vector.extract_strided_slice %49 {offsets = [0, 0], sizes = [2, 96], strides = [1, 1]} : vector<2x128xf32> to vector<2x96xf32>
    %51 = arith.negf %50 : vector<2x96xf32>
    %52 = math.exp %51 : vector<2x96xf32>
    %cst_14 = arith.constant 1.000000e+00 : f32
    %53 = vector.broadcast %cst_14 : f32 to vector<2x96xf32>
    %54 = arith.addf %53, %52 : vector<2x96xf32>
    %55 = arith.divf %53, %54 : vector<2x96xf32>
    %56 = vector.extract_strided_slice %55 {offsets = [0, 0], sizes = [2, 32], strides = [1, 1]} : vector<2x96xf32> to vector<2x32xf32>
    %57 = vector.extract_strided_slice %55 {offsets = [0, 32], sizes = [2, 32], strides = [1, 1]} : vector<2x96xf32> to vector<2x32xf32>
    %58 = vector.extract_strided_slice %55 {offsets = [0, 64], sizes = [2, 32], strides = [1, 1]} : vector<2x96xf32> to vector<2x32xf32>
    %59 = vector.extract_strided_slice %49 {offsets = [0, 96], sizes = [2, 32], strides = [1, 1]} : vector<2x128xf32> to vector<2x32xf32>
    %60 = math.tanh %59 : vector<2x32xf32>
    %61 = arith.mulf %57, %44 : vector<2x32xf32>
    %62 = arith.mulf %56, %60 : vector<2x32xf32>
    %63 = arith.addf %61, %62 : vector<2x32xf32>
    %64 = math.tanh %63 : vector<2x32xf32>
    %65 = arith.mulf %58, %64 : vector<2x32xf32>
    %66 = vector.extract_strided_slice %6 {offsets = [6, 0], sizes = [2, 128], strides = [1, 1]} : vector<16x128xf32> to vector<2x128xf32>
    %cst_15 = arith.constant dense<0.000000e+00> : vector<2x128xf32>
    %67 = tpu.matmul %65, %2, %cst_15 {dimension_numbers = #tpu.dot_dimension_numbers<[1], [0], [0], [1], [0, 0, 1, 1], [], []>} : vector<2x32xf32>, vector<32x128xf32>, vector<2x128xf32> -> vector<2x128xf32>
    %68 = arith.addf %66, %67 : vector<2x128xf32>
    %69 = vector.extract_strided_slice %68 {offsets = [0, 0], sizes = [2, 96], strides = [1, 1]} : vector<2x128xf32> to vector<2x96xf32>
    %70 = arith.negf %69 : vector<2x96xf32>
    %71 = math.exp %70 : vector<2x96xf32>
    %cst_16 = arith.constant 1.000000e+00 : f32
    %72 = vector.broadcast %cst_16 : f32 to vector<2x96xf32>
    %73 = arith.addf %72, %71 : vector<2x96xf32>
    %74 = arith.divf %72, %73 : vector<2x96xf32>
    %75 = vector.extract_strided_slice %74 {offsets = [0, 0], sizes = [2, 32], strides = [1, 1]} : vector<2x96xf32> to vector<2x32xf32>
    %76 = vector.extract_strided_slice %74 {offsets = [0, 32], sizes = [2, 32], strides = [1, 1]} : vector<2x96xf32> to vector<2x32xf32>
    %77 = vector.extract_strided_slice %74 {offsets = [0, 64], sizes = [2, 32], strides = [1, 1]} : vector<2x96xf32> to vector<2x32xf32>
    %78 = vector.extract_strided_slice %68 {offsets = [0, 96], sizes = [2, 32], strides = [1, 1]} : vector<2x128xf32> to vector<2x32xf32>
    %79 = math.tanh %78 : vector<2x32xf32>
    %80 = arith.mulf %76, %63 : vector<2x32xf32>
    %81 = arith.mulf %75, %79 : vector<2x32xf32>
    %82 = arith.addf %80, %81 : vector<2x32xf32>
    %83 = math.tanh %82 : vector<2x32xf32>
    %84 = arith.mulf %77, %83 : vector<2x32xf32>
    %85 = vector.extract_strided_slice %6 {offsets = [8, 0], sizes = [2, 128], strides = [1, 1]} : vector<16x128xf32> to vector<2x128xf32>
    %cst_17 = arith.constant dense<0.000000e+00> : vector<2x128xf32>
    %86 = tpu.matmul %84, %2, %cst_17 {dimension_numbers = #tpu.dot_dimension_numbers<[1], [0], [0], [1], [0, 0, 1, 1], [], []>} : vector<2x32xf32>, vector<32x128xf32>, vector<2x128xf32> -> vector<2x128xf32>
    %87 = arith.addf %85, %86 : vector<2x128xf32>
    %88 = vector.extract_strided_slice %87 {offsets = [0, 0], sizes = [2, 96], strides = [1, 1]} : vector<2x128xf32> to vector<2x96xf32>
    %89 = arith.negf %88 : vector<2x96xf32>
    %90 = math.exp %89 : vector<2x96xf32>
    %cst_18 = arith.constant 1.000000e+00 : f32
    %91 = vector.broadcast %cst_18 : f32 to vector<2x96xf32>
    %92 = arith.addf %91, %90 : vector<2x96xf32>
    %93 = arith.divf %91, %92 : vector<2x96xf32>
    %94 = vector.extract_strided_slice %93 {offsets = [0, 0], sizes = [2, 32], strides = [1, 1]} : vector<2x96xf32> to vector<2x32xf32>
    %95 = vector.extract_strided_slice %93 {offsets = [0, 32], sizes = [2, 32], strides = [1, 1]} : vector<2x96xf32> to vector<2x32xf32>
    %96 = vector.extract_strided_slice %93 {offsets = [0, 64], sizes = [2, 32], strides = [1, 1]} : vector<2x96xf32> to vector<2x32xf32>
    %97 = vector.extract_strided_slice %87 {offsets = [0, 96], sizes = [2, 32], strides = [1, 1]} : vector<2x128xf32> to vector<2x32xf32>
    %98 = math.tanh %97 : vector<2x32xf32>
    %99 = arith.mulf %95, %82 : vector<2x32xf32>
    %100 = arith.mulf %94, %98 : vector<2x32xf32>
    %101 = arith.addf %99, %100 : vector<2x32xf32>
    %102 = math.tanh %101 : vector<2x32xf32>
    %103 = arith.mulf %96, %102 : vector<2x32xf32>
    %104 = vector.extract_strided_slice %6 {offsets = [10, 0], sizes = [2, 128], strides = [1, 1]} : vector<16x128xf32> to vector<2x128xf32>
    %cst_19 = arith.constant dense<0.000000e+00> : vector<2x128xf32>
    %105 = tpu.matmul %103, %2, %cst_19 {dimension_numbers = #tpu.dot_dimension_numbers<[1], [0], [0], [1], [0, 0, 1, 1], [], []>} : vector<2x32xf32>, vector<32x128xf32>, vector<2x128xf32> -> vector<2x128xf32>
    %106 = arith.addf %104, %105 : vector<2x128xf32>
    %107 = vector.extract_strided_slice %106 {offsets = [0, 0], sizes = [2, 96], strides = [1, 1]} : vector<2x128xf32> to vector<2x96xf32>
    %108 = arith.negf %107 : vector<2x96xf32>
    %109 = math.exp %108 : vector<2x96xf32>
    %cst_20 = arith.constant 1.000000e+00 : f32
    %110 = vector.broadcast %cst_20 : f32 to vector<2x96xf32>
    %111 = arith.addf %110, %109 : vector<2x96xf32>
    %112 = arith.divf %110, %111 : vector<2x96xf32>
    %113 = vector.extract_strided_slice %112 {offsets = [0, 0], sizes = [2, 32], strides = [1, 1]} : vector<2x96xf32> to vector<2x32xf32>
    %114 = vector.extract_strided_slice %112 {offsets = [0, 32], sizes = [2, 32], strides = [1, 1]} : vector<2x96xf32> to vector<2x32xf32>
    %115 = vector.extract_strided_slice %112 {offsets = [0, 64], sizes = [2, 32], strides = [1, 1]} : vector<2x96xf32> to vector<2x32xf32>
    %116 = vector.extract_strided_slice %106 {offsets = [0, 96], sizes = [2, 32], strides = [1, 1]} : vector<2x128xf32> to vector<2x32xf32>
    %117 = math.tanh %116 : vector<2x32xf32>
    %118 = arith.mulf %114, %101 : vector<2x32xf32>
    %119 = arith.mulf %113, %117 : vector<2x32xf32>
    %120 = arith.addf %118, %119 : vector<2x32xf32>
    %121 = math.tanh %120 : vector<2x32xf32>
    %122 = arith.mulf %115, %121 : vector<2x32xf32>
    %123 = vector.extract_strided_slice %6 {offsets = [12, 0], sizes = [2, 128], strides = [1, 1]} : vector<16x128xf32> to vector<2x128xf32>
    %cst_21 = arith.constant dense<0.000000e+00> : vector<2x128xf32>
    %124 = tpu.matmul %122, %2, %cst_21 {dimension_numbers = #tpu.dot_dimension_numbers<[1], [0], [0], [1], [0, 0, 1, 1], [], []>} : vector<2x32xf32>, vector<32x128xf32>, vector<2x128xf32> -> vector<2x128xf32>
    %125 = arith.addf %123, %124 : vector<2x128xf32>
    %126 = vector.extract_strided_slice %125 {offsets = [0, 0], sizes = [2, 96], strides = [1, 1]} : vector<2x128xf32> to vector<2x96xf32>
    %127 = arith.negf %126 : vector<2x96xf32>
    %128 = math.exp %127 : vector<2x96xf32>
    %cst_22 = arith.constant 1.000000e+00 : f32
    %129 = vector.broadcast %cst_22 : f32 to vector<2x96xf32>
    %130 = arith.addf %129, %128 : vector<2x96xf32>
    %131 = arith.divf %129, %130 : vector<2x96xf32>
    %132 = vector.extract_strided_slice %131 {offsets = [0, 0], sizes = [2, 32], strides = [1, 1]} : vector<2x96xf32> to vector<2x32xf32>
    %133 = vector.extract_strided_slice %131 {offsets = [0, 32], sizes = [2, 32], strides = [1, 1]} : vector<2x96xf32> to vector<2x32xf32>
    %134 = vector.extract_strided_slice %131 {offsets = [0, 64], sizes = [2, 32], strides = [1, 1]} : vector<2x96xf32> to vector<2x32xf32>
    %135 = vector.extract_strided_slice %125 {offsets = [0, 96], sizes = [2, 32], strides = [1, 1]} : vector<2x128xf32> to vector<2x32xf32>
    %136 = math.tanh %135 : vector<2x32xf32>
    %137 = arith.mulf %133, %120 : vector<2x32xf32>
    %138 = arith.mulf %132, %136 : vector<2x32xf32>
    %139 = arith.addf %137, %138 : vector<2x32xf32>
    %140 = math.tanh %139 : vector<2x32xf32>
    %141 = arith.mulf %134, %140 : vector<2x32xf32>
    %142 = vector.extract_strided_slice %6 {offsets = [14, 0], sizes = [2, 128], strides = [1, 1]} : vector<16x128xf32> to vector<2x128xf32>
    %cst_23 = arith.constant dense<0.000000e+00> : vector<2x128xf32>
    %143 = tpu.matmul %141, %2, %cst_23 {dimension_numbers = #tpu.dot_dimension_numbers<[1], [0], [0], [1], [0, 0, 1, 1], [], []>} : vector<2x32xf32>, vector<32x128xf32>, vector<2x128xf32> -> vector<2x128xf32>
    %144 = arith.addf %142, %143 : vector<2x128xf32>
    %145 = vector.extract_strided_slice %144 {offsets = [0, 0], sizes = [2, 96], strides = [1, 1]} : vector<2x128xf32> to vector<2x96xf32>
    %146 = arith.negf %145 : vector<2x96xf32>
    %147 = math.exp %146 : vector<2x96xf32>
    %cst_24 = arith.constant 1.000000e+00 : f32
    %148 = vector.broadcast %cst_24 : f32 to vector<2x96xf32>
    %149 = arith.addf %148, %147 : vector<2x96xf32>
    %150 = arith.divf %148, %149 : vector<2x96xf32>
    %151 = vector.extract_strided_slice %150 {offsets = [0, 0], sizes = [2, 32], strides = [1, 1]} : vector<2x96xf32> to vector<2x32xf32>
    %152 = vector.extract_strided_slice %150 {offsets = [0, 32], sizes = [2, 32], strides = [1, 1]} : vector<2x96xf32> to vector<2x32xf32>
    %153 = vector.extract_strided_slice %150 {offsets = [0, 64], sizes = [2, 32], strides = [1, 1]} : vector<2x96xf32> to vector<2x32xf32>
    %154 = vector.extract_strided_slice %144 {offsets = [0, 96], sizes = [2, 32], strides = [1, 1]} : vector<2x128xf32> to vector<2x32xf32>
    %155 = math.tanh %154 : vector<2x32xf32>
    %156 = arith.mulf %152, %139 : vector<2x32xf32>
    %157 = arith.mulf %151, %155 : vector<2x32xf32>
    %158 = arith.addf %156, %157 : vector<2x32xf32>
    %159 = math.tanh %158 : vector<2x32xf32>
    %160 = arith.mulf %153, %159 : vector<2x32xf32>
    %161 = tpu.concatenate %27, %46, %65, %84, %103, %122, %141, %160 in 0 : vector<2x32xf32>, vector<2x32xf32>, vector<2x32xf32>, vector<2x32xf32>, vector<2x32xf32>, vector<2x32xf32>, vector<2x32xf32>, vector<2x32xf32> -> vector<16x32xf32>
    %c0_25 = arith.constant 0 : index
    %c0_26 = arith.constant 0 : index
    %162 = vector.load %arg5[%c0_25, %c0_26] : memref<32x128xf32, #tpu.memory_space<vmem>>, vector<32x128xf32>
    %c0_27 = arith.constant 0 : index
    %c0_28 = arith.constant 0 : index
    %163 = vector.load %arg6[%c0_27, %c0_28] : memref<32x128xf32, #tpu.memory_space<vmem>>, vector<32x128xf32>
    %c0_29 = arith.constant 0 : index
    %c0_30 = arith.constant 0 : index
    %164 = vector.load %arg7[%c0_29, %c0_30] : memref<1x128xf32, #tpu.memory_space<vmem>>, vector<1x128xf32>
    %cst_31 = arith.constant dense<0.000000e+00> : vector<16x128xf32>
    %165 = tpu.matmul %161, %162, %cst_31 {dimension_numbers = #tpu.dot_dimension_numbers<[1], [0], [0], [1], [0, 0, 1, 1], [], []>} : vector<16x32xf32>, vector<32x128xf32>, vector<16x128xf32> -> vector<16x128xf32>
    %166 = vector.broadcast %164 : vector<1x128xf32> to vector<16x128xf32>
    %167 = arith.addf %165, %166 : vector<16x128xf32>
    %cst_32 = arith.constant 0.000000e+00 : f32
    %168 = vector.broadcast %cst_32 : f32 to vector<2x32xf32>
    %cst_33 = arith.constant 0.000000e+00 : f32
    %169 = vector.broadcast %cst_33 : f32 to vector<2x32xf32>
    %170 = vector.extract_strided_slice %167 {offsets = [0, 0], sizes = [2, 128], strides = [1, 1]} : vector<16x128xf32> to vector<2x128xf32>
    %cst_34 = arith.constant dense<0.000000e+00> : vector<2x128xf32>
    %171 = tpu.matmul %168, %163, %cst_34 {dimension_numbers = #tpu.dot_dimension_numbers<[1], [0], [0], [1], [0, 0, 1, 1], [], []>} : vector<2x32xf32>, vector<32x128xf32>, vector<2x128xf32> -> vector<2x128xf32>
    %172 = arith.addf %170, %171 : vector<2x128xf32>
    %173 = vector.extract_strided_slice %172 {offsets = [0, 0], sizes = [2, 96], strides = [1, 1]} : vector<2x128xf32> to vector<2x96xf32>
    %174 = arith.negf %173 : vector<2x96xf32>
    %175 = math.exp %174 : vector<2x96xf32>
    %cst_35 = arith.constant 1.000000e+00 : f32
    %176 = vector.broadcast %cst_35 : f32 to vector<2x96xf32>
    %177 = arith.addf %176, %175 : vector<2x96xf32>
    %178 = arith.divf %176, %177 : vector<2x96xf32>
    %179 = vector.extract_strided_slice %178 {offsets = [0, 0], sizes = [2, 32], strides = [1, 1]} : vector<2x96xf32> to vector<2x32xf32>
    %180 = vector.extract_strided_slice %178 {offsets = [0, 32], sizes = [2, 32], strides = [1, 1]} : vector<2x96xf32> to vector<2x32xf32>
    %181 = vector.extract_strided_slice %178 {offsets = [0, 64], sizes = [2, 32], strides = [1, 1]} : vector<2x96xf32> to vector<2x32xf32>
    %182 = vector.extract_strided_slice %172 {offsets = [0, 96], sizes = [2, 32], strides = [1, 1]} : vector<2x128xf32> to vector<2x32xf32>
    %183 = math.tanh %182 : vector<2x32xf32>
    %184 = arith.mulf %180, %169 : vector<2x32xf32>
    %185 = arith.mulf %179, %183 : vector<2x32xf32>
    %186 = arith.addf %184, %185 : vector<2x32xf32>
    %187 = math.tanh %186 : vector<2x32xf32>
    %188 = arith.mulf %181, %187 : vector<2x32xf32>
    %189 = vector.extract_strided_slice %167 {offsets = [2, 0], sizes = [2, 128], strides = [1, 1]} : vector<16x128xf32> to vector<2x128xf32>
    %cst_36 = arith.constant dense<0.000000e+00> : vector<2x128xf32>
    %190 = tpu.matmul %188, %163, %cst_36 {dimension_numbers = #tpu.dot_dimension_numbers<[1], [0], [0], [1], [0, 0, 1, 1], [], []>} : vector<2x32xf32>, vector<32x128xf32>, vector<2x128xf32> -> vector<2x128xf32>
    %191 = arith.addf %189, %190 : vector<2x128xf32>
    %192 = vector.extract_strided_slice %191 {offsets = [0, 0], sizes = [2, 96], strides = [1, 1]} : vector<2x128xf32> to vector<2x96xf32>
    %193 = arith.negf %192 : vector<2x96xf32>
    %194 = math.exp %193 : vector<2x96xf32>
    %cst_37 = arith.constant 1.000000e+00 : f32
    %195 = vector.broadcast %cst_37 : f32 to vector<2x96xf32>
    %196 = arith.addf %195, %194 : vector<2x96xf32>
    %197 = arith.divf %195, %196 : vector<2x96xf32>
    %198 = vector.extract_strided_slice %197 {offsets = [0, 0], sizes = [2, 32], strides = [1, 1]} : vector<2x96xf32> to vector<2x32xf32>
    %199 = vector.extract_strided_slice %197 {offsets = [0, 32], sizes = [2, 32], strides = [1, 1]} : vector<2x96xf32> to vector<2x32xf32>
    %200 = vector.extract_strided_slice %197 {offsets = [0, 64], sizes = [2, 32], strides = [1, 1]} : vector<2x96xf32> to vector<2x32xf32>
    %201 = vector.extract_strided_slice %191 {offsets = [0, 96], sizes = [2, 32], strides = [1, 1]} : vector<2x128xf32> to vector<2x32xf32>
    %202 = math.tanh %201 : vector<2x32xf32>
    %203 = arith.mulf %199, %186 : vector<2x32xf32>
    %204 = arith.mulf %198, %202 : vector<2x32xf32>
    %205 = arith.addf %203, %204 : vector<2x32xf32>
    %206 = math.tanh %205 : vector<2x32xf32>
    %207 = arith.mulf %200, %206 : vector<2x32xf32>
    %208 = vector.extract_strided_slice %167 {offsets = [4, 0], sizes = [2, 128], strides = [1, 1]} : vector<16x128xf32> to vector<2x128xf32>
    %cst_38 = arith.constant dense<0.000000e+00> : vector<2x128xf32>
    %209 = tpu.matmul %207, %163, %cst_38 {dimension_numbers = #tpu.dot_dimension_numbers<[1], [0], [0], [1], [0, 0, 1, 1], [], []>} : vector<2x32xf32>, vector<32x128xf32>, vector<2x128xf32> -> vector<2x128xf32>
    %210 = arith.addf %208, %209 : vector<2x128xf32>
    %211 = vector.extract_strided_slice %210 {offsets = [0, 0], sizes = [2, 96], strides = [1, 1]} : vector<2x128xf32> to vector<2x96xf32>
    %212 = arith.negf %211 : vector<2x96xf32>
    %213 = math.exp %212 : vector<2x96xf32>
    %cst_39 = arith.constant 1.000000e+00 : f32
    %214 = vector.broadcast %cst_39 : f32 to vector<2x96xf32>
    %215 = arith.addf %214, %213 : vector<2x96xf32>
    %216 = arith.divf %214, %215 : vector<2x96xf32>
    %217 = vector.extract_strided_slice %216 {offsets = [0, 0], sizes = [2, 32], strides = [1, 1]} : vector<2x96xf32> to vector<2x32xf32>
    %218 = vector.extract_strided_slice %216 {offsets = [0, 32], sizes = [2, 32], strides = [1, 1]} : vector<2x96xf32> to vector<2x32xf32>
    %219 = vector.extract_strided_slice %216 {offsets = [0, 64], sizes = [2, 32], strides = [1, 1]} : vector<2x96xf32> to vector<2x32xf32>
    %220 = vector.extract_strided_slice %210 {offsets = [0, 96], sizes = [2, 32], strides = [1, 1]} : vector<2x128xf32> to vector<2x32xf32>
    %221 = math.tanh %220 : vector<2x32xf32>
    %222 = arith.mulf %218, %205 : vector<2x32xf32>
    %223 = arith.mulf %217, %221 : vector<2x32xf32>
    %224 = arith.addf %222, %223 : vector<2x32xf32>
    %225 = math.tanh %224 : vector<2x32xf32>
    %226 = arith.mulf %219, %225 : vector<2x32xf32>
    %227 = vector.extract_strided_slice %167 {offsets = [6, 0], sizes = [2, 128], strides = [1, 1]} : vector<16x128xf32> to vector<2x128xf32>
    %cst_40 = arith.constant dense<0.000000e+00> : vector<2x128xf32>
    %228 = tpu.matmul %226, %163, %cst_40 {dimension_numbers = #tpu.dot_dimension_numbers<[1], [0], [0], [1], [0, 0, 1, 1], [], []>} : vector<2x32xf32>, vector<32x128xf32>, vector<2x128xf32> -> vector<2x128xf32>
    %229 = arith.addf %227, %228 : vector<2x128xf32>
    %230 = vector.extract_strided_slice %229 {offsets = [0, 0], sizes = [2, 96], strides = [1, 1]} : vector<2x128xf32> to vector<2x96xf32>
    %231 = arith.negf %230 : vector<2x96xf32>
    %232 = math.exp %231 : vector<2x96xf32>
    %cst_41 = arith.constant 1.000000e+00 : f32
    %233 = vector.broadcast %cst_41 : f32 to vector<2x96xf32>
    %234 = arith.addf %233, %232 : vector<2x96xf32>
    %235 = arith.divf %233, %234 : vector<2x96xf32>
    %236 = vector.extract_strided_slice %235 {offsets = [0, 0], sizes = [2, 32], strides = [1, 1]} : vector<2x96xf32> to vector<2x32xf32>
    %237 = vector.extract_strided_slice %235 {offsets = [0, 32], sizes = [2, 32], strides = [1, 1]} : vector<2x96xf32> to vector<2x32xf32>
    %238 = vector.extract_strided_slice %235 {offsets = [0, 64], sizes = [2, 32], strides = [1, 1]} : vector<2x96xf32> to vector<2x32xf32>
    %239 = vector.extract_strided_slice %229 {offsets = [0, 96], sizes = [2, 32], strides = [1, 1]} : vector<2x128xf32> to vector<2x32xf32>
    %240 = math.tanh %239 : vector<2x32xf32>
    %241 = arith.mulf %237, %224 : vector<2x32xf32>
    %242 = arith.mulf %236, %240 : vector<2x32xf32>
    %243 = arith.addf %241, %242 : vector<2x32xf32>
    %244 = math.tanh %243 : vector<2x32xf32>
    %245 = arith.mulf %238, %244 : vector<2x32xf32>
    %246 = vector.extract_strided_slice %167 {offsets = [8, 0], sizes = [2, 128], strides = [1, 1]} : vector<16x128xf32> to vector<2x128xf32>
    %cst_42 = arith.constant dense<0.000000e+00> : vector<2x128xf32>
    %247 = tpu.matmul %245, %163, %cst_42 {dimension_numbers = #tpu.dot_dimension_numbers<[1], [0], [0], [1], [0, 0, 1, 1], [], []>} : vector<2x32xf32>, vector<32x128xf32>, vector<2x128xf32> -> vector<2x128xf32>
    %248 = arith.addf %246, %247 : vector<2x128xf32>
    %249 = vector.extract_strided_slice %248 {offsets = [0, 0], sizes = [2, 96], strides = [1, 1]} : vector<2x128xf32> to vector<2x96xf32>
    %250 = arith.negf %249 : vector<2x96xf32>
    %251 = math.exp %250 : vector<2x96xf32>
    %cst_43 = arith.constant 1.000000e+00 : f32
    %252 = vector.broadcast %cst_43 : f32 to vector<2x96xf32>
    %253 = arith.addf %252, %251 : vector<2x96xf32>
    %254 = arith.divf %252, %253 : vector<2x96xf32>
    %255 = vector.extract_strided_slice %254 {offsets = [0, 0], sizes = [2, 32], strides = [1, 1]} : vector<2x96xf32> to vector<2x32xf32>
    %256 = vector.extract_strided_slice %254 {offsets = [0, 32], sizes = [2, 32], strides = [1, 1]} : vector<2x96xf32> to vector<2x32xf32>
    %257 = vector.extract_strided_slice %254 {offsets = [0, 64], sizes = [2, 32], strides = [1, 1]} : vector<2x96xf32> to vector<2x32xf32>
    %258 = vector.extract_strided_slice %248 {offsets = [0, 96], sizes = [2, 32], strides = [1, 1]} : vector<2x128xf32> to vector<2x32xf32>
    %259 = math.tanh %258 : vector<2x32xf32>
    %260 = arith.mulf %256, %243 : vector<2x32xf32>
    %261 = arith.mulf %255, %259 : vector<2x32xf32>
    %262 = arith.addf %260, %261 : vector<2x32xf32>
    %263 = math.tanh %262 : vector<2x32xf32>
    %264 = arith.mulf %257, %263 : vector<2x32xf32>
    %265 = vector.extract_strided_slice %167 {offsets = [10, 0], sizes = [2, 128], strides = [1, 1]} : vector<16x128xf32> to vector<2x128xf32>
    %cst_44 = arith.constant dense<0.000000e+00> : vector<2x128xf32>
    %266 = tpu.matmul %264, %163, %cst_44 {dimension_numbers = #tpu.dot_dimension_numbers<[1], [0], [0], [1], [0, 0, 1, 1], [], []>} : vector<2x32xf32>, vector<32x128xf32>, vector<2x128xf32> -> vector<2x128xf32>
    %267 = arith.addf %265, %266 : vector<2x128xf32>
    %268 = vector.extract_strided_slice %267 {offsets = [0, 0], sizes = [2, 96], strides = [1, 1]} : vector<2x128xf32> to vector<2x96xf32>
    %269 = arith.negf %268 : vector<2x96xf32>
    %270 = math.exp %269 : vector<2x96xf32>
    %cst_45 = arith.constant 1.000000e+00 : f32
    %271 = vector.broadcast %cst_45 : f32 to vector<2x96xf32>
    %272 = arith.addf %271, %270 : vector<2x96xf32>
    %273 = arith.divf %271, %272 : vector<2x96xf32>
    %274 = vector.extract_strided_slice %273 {offsets = [0, 0], sizes = [2, 32], strides = [1, 1]} : vector<2x96xf32> to vector<2x32xf32>
    %275 = vector.extract_strided_slice %273 {offsets = [0, 32], sizes = [2, 32], strides = [1, 1]} : vector<2x96xf32> to vector<2x32xf32>
    %276 = vector.extract_strided_slice %273 {offsets = [0, 64], sizes = [2, 32], strides = [1, 1]} : vector<2x96xf32> to vector<2x32xf32>
    %277 = vector.extract_strided_slice %267 {offsets = [0, 96], sizes = [2, 32], strides = [1, 1]} : vector<2x128xf32> to vector<2x32xf32>
    %278 = math.tanh %277 : vector<2x32xf32>
    %279 = arith.mulf %275, %262 : vector<2x32xf32>
    %280 = arith.mulf %274, %278 : vector<2x32xf32>
    %281 = arith.addf %279, %280 : vector<2x32xf32>
    %282 = math.tanh %281 : vector<2x32xf32>
    %283 = arith.mulf %276, %282 : vector<2x32xf32>
    %284 = vector.extract_strided_slice %167 {offsets = [12, 0], sizes = [2, 128], strides = [1, 1]} : vector<16x128xf32> to vector<2x128xf32>
    %cst_46 = arith.constant dense<0.000000e+00> : vector<2x128xf32>
    %285 = tpu.matmul %283, %163, %cst_46 {dimension_numbers = #tpu.dot_dimension_numbers<[1], [0], [0], [1], [0, 0, 1, 1], [], []>} : vector<2x32xf32>, vector<32x128xf32>, vector<2x128xf32> -> vector<2x128xf32>
    %286 = arith.addf %284, %285 : vector<2x128xf32>
    %287 = vector.extract_strided_slice %286 {offsets = [0, 0], sizes = [2, 96], strides = [1, 1]} : vector<2x128xf32> to vector<2x96xf32>
    %288 = arith.negf %287 : vector<2x96xf32>
    %289 = math.exp %288 : vector<2x96xf32>
    %cst_47 = arith.constant 1.000000e+00 : f32
    %290 = vector.broadcast %cst_47 : f32 to vector<2x96xf32>
    %291 = arith.addf %290, %289 : vector<2x96xf32>
    %292 = arith.divf %290, %291 : vector<2x96xf32>
    %293 = vector.extract_strided_slice %292 {offsets = [0, 0], sizes = [2, 32], strides = [1, 1]} : vector<2x96xf32> to vector<2x32xf32>
    %294 = vector.extract_strided_slice %292 {offsets = [0, 32], sizes = [2, 32], strides = [1, 1]} : vector<2x96xf32> to vector<2x32xf32>
    %295 = vector.extract_strided_slice %292 {offsets = [0, 64], sizes = [2, 32], strides = [1, 1]} : vector<2x96xf32> to vector<2x32xf32>
    %296 = vector.extract_strided_slice %286 {offsets = [0, 96], sizes = [2, 32], strides = [1, 1]} : vector<2x128xf32> to vector<2x32xf32>
    %297 = math.tanh %296 : vector<2x32xf32>
    %298 = arith.mulf %294, %281 : vector<2x32xf32>
    %299 = arith.mulf %293, %297 : vector<2x32xf32>
    %300 = arith.addf %298, %299 : vector<2x32xf32>
    %301 = math.tanh %300 : vector<2x32xf32>
    %302 = arith.mulf %295, %301 : vector<2x32xf32>
    %303 = vector.extract_strided_slice %167 {offsets = [14, 0], sizes = [2, 128], strides = [1, 1]} : vector<16x128xf32> to vector<2x128xf32>
    %cst_48 = arith.constant dense<0.000000e+00> : vector<2x128xf32>
    %304 = tpu.matmul %302, %163, %cst_48 {dimension_numbers = #tpu.dot_dimension_numbers<[1], [0], [0], [1], [0, 0, 1, 1], [], []>} : vector<2x32xf32>, vector<32x128xf32>, vector<2x128xf32> -> vector<2x128xf32>
    %305 = arith.addf %303, %304 : vector<2x128xf32>
    %306 = vector.extract_strided_slice %305 {offsets = [0, 0], sizes = [2, 96], strides = [1, 1]} : vector<2x128xf32> to vector<2x96xf32>
    %307 = arith.negf %306 : vector<2x96xf32>
    %308 = math.exp %307 : vector<2x96xf32>
    %cst_49 = arith.constant 1.000000e+00 : f32
    %309 = vector.broadcast %cst_49 : f32 to vector<2x96xf32>
    %310 = arith.addf %309, %308 : vector<2x96xf32>
    %311 = arith.divf %309, %310 : vector<2x96xf32>
    %312 = vector.extract_strided_slice %311 {offsets = [0, 0], sizes = [2, 32], strides = [1, 1]} : vector<2x96xf32> to vector<2x32xf32>
    %313 = vector.extract_strided_slice %311 {offsets = [0, 32], sizes = [2, 32], strides = [1, 1]} : vector<2x96xf32> to vector<2x32xf32>
    %314 = vector.extract_strided_slice %311 {offsets = [0, 64], sizes = [2, 32], strides = [1, 1]} : vector<2x96xf32> to vector<2x32xf32>
    %315 = vector.extract_strided_slice %305 {offsets = [0, 96], sizes = [2, 32], strides = [1, 1]} : vector<2x128xf32> to vector<2x32xf32>
    %316 = math.tanh %315 : vector<2x32xf32>
    %317 = arith.mulf %313, %300 : vector<2x32xf32>
    %318 = arith.mulf %312, %316 : vector<2x32xf32>
    %319 = arith.addf %317, %318 : vector<2x32xf32>
    %320 = math.tanh %319 : vector<2x32xf32>
    %321 = arith.mulf %314, %320 : vector<2x32xf32>
    %c0_50 = arith.constant 0 : index
    %c0_51 = arith.constant 0 : index
    %322 = vector.load %arg8[%c0_50, %c0_51] : memref<32x4xf32, #tpu.memory_space<vmem>>, vector<32x4xf32>
    %cst_52 = arith.constant dense<0.000000e+00> : vector<2x4xf32>
    %323 = tpu.matmul %321, %322, %cst_52 {dimension_numbers = #tpu.dot_dimension_numbers<[1], [0], [0], [1], [0, 0, 1, 1], [], []>} : vector<2x32xf32>, vector<32x4xf32>, vector<2x4xf32> -> vector<2x4xf32>
    %c0_53 = arith.constant 0 : index
    %c0_54 = arith.constant 0 : index
    %324 = vector.load %arg9[%c0_53, %c0_54] : memref<1x4xf32, #tpu.memory_space<vmem>>, vector<1x4xf32>
    %325 = vector.broadcast %324 : vector<1x4xf32> to vector<2x4xf32>
    %326 = arith.addf %323, %325 : vector<2x4xf32>
    %c0_55 = arith.constant 0 : index
    %c0_56 = arith.constant 0 : index
    %327 = vector.load %arg10[%c0_55, %c0_56] : memref<2x4xf32, #tpu.memory_space<vmem>>, vector<2x4xf32>
    tpu.vector_store %arg10[%c0_55, %c0_56], %326 {strides = array<i32>} : memref<2x4xf32, #tpu.memory_space<vmem>>, vector<2x4xf32>,
    return
  }
  func.func @transform_0(%arg0: i32) -> (i32, i32) {
    %c0_i32 = arith.constant 0 : i32
    %c0_i32_0 = arith.constant 0 : i32
    %c0_i32_1 = arith.constant 0 : i32
    return %c0_i32, %c0_i32_0 : i32, i32
  }
  func.func @transform_1(%arg0: i32) -> (i32, i32) {
    %c0_i32 = arith.constant 0 : i32
    %c0_i32_0 = arith.constant 0 : i32
    %c0_i32_1 = arith.constant 0 : i32
    return %c0_i32, %c0_i32_0 : i32, i32
  }
  func.func @transform_2(%arg0: i32) -> (i32, i32) {
    %c0_i32 = arith.constant 0 : i32
    %c0_i32_0 = arith.constant 0 : i32
    %c0_i32_1 = arith.constant 0 : i32
    return %c0_i32, %c0_i32_0 : i32, i32
  }
  func.func @transform_3(%arg0: i32) -> (i32, i32) {
    %c0_i32 = arith.constant 0 : i32
    %c0_i32_0 = arith.constant 0 : i32
    %c0_i32_1 = arith.constant 0 : i32
    return %c0_i32, %c0_i32_0 : i32, i32
  }
  func.func @transform_4(%arg0: i32) -> (i32, i32) {
    %c0_i32 = arith.constant 0 : i32
    %c0_i32_0 = arith.constant 0 : i32
    %c0_i32_1 = arith.constant 0 : i32
    return %c0_i32, %c0_i32_0 : i32, i32
  }
  func.func @transform_5(%arg0: i32) -> (i32, i32) {
    %c0_i32 = arith.constant 0 : i32
    %c0_i32_0 = arith.constant 0 : i32
    %c0_i32_1 = arith.constant 0 : i32
    return %c0_i32, %c0_i32_0 : i32, i32
  }
  func.func @transform_6(%arg0: i32) -> (i32, i32) {
    %c0_i32 = arith.constant 0 : i32
    %c0_i32_0 = arith.constant 0 : i32
    %c0_i32_1 = arith.constant 0 : i32
    return %c0_i32, %c0_i32_0 : i32, i32
  }
  func.func @transform_7(%arg0: i32) -> (i32, i32) {
    %c0_i32 = arith.constant 0 : i32
    %c0_i32_0 = arith.constant 0 : i32
    %c0_i32_1 = arith.constant 0 : i32
    return %c0_i32, %c0_i32_0 : i32, i32
  }
  func.func @transform_8(%arg0: i32) -> (i32, i32) {
    %c0_i32 = arith.constant 0 : i32
    %c0_i32_0 = arith.constant 0 : i32
    %c0_i32_1 = arith.constant 0 : i32
    return %c0_i32, %c0_i32_0 : i32, i32
  }
  func.func @transform_9(%arg0: i32) -> (i32, i32) {
    %c0_i32 = arith.constant 0 : i32
    %c0_i32_0 = arith.constant 0 : i32
    %c0_i32_1 = arith.constant 0 : i32
    return %c0_i32, %c0_i32_0 : i32, i32
  }
}

</mosaic_0001>

<bundles_post_ra>
// kernel: lstm_model_forward.1
= control target key start
LH: loop header
LB: loop body
LE: loop exit
PB: predicated region body
PF: predicated region fallthrough
CT: control target
= control target key end

     0   :  { %14 = vsyncpa [#allocation3], 0  ;;  %s3105_s0 = inlined_call_operand.vmem [shape: f32[16,16], index: 0, kind: input, shape index: {}]   ;;  %s3106_s1 = inlined_call_operand.hbm [shape: f32[16,128], index: 1, kind: input, shape index: {}]   ;;  %s3107_s2 = inlined_call_operand.vmem [shape: f32[32,128], index: 2, kind: input, shape index: {}]   ;;  %s3108_s3 = inlined_call_operand.vmem [shape: f32[1,128], index: 3, kind: input, shape index: {}]   ;;  %s3109_s4 = inlined_call_operand.vmem [shape: f32[32,128], index: 4, kind: input, shape index: {}]   ;;  %s3110_s5 = inlined_call_operand.vmem [shape: f32[32,128], index: 5, kind: input, shape index: {}]   ;;  %s3111_s6 = inlined_call_operand.vmem [shape: f32[1,128], index: 6, kind: input, shape index: {}]   ;;  %s3112_s7 = inlined_call_operand.vmem [shape: f32[32,4], index: 7, kind: input, shape index: {}]   ;;  %s3113_s8 = inlined_call_operand.hbm [shape: f32[1,4], index: 8, kind: input, shape index: {}]   ;;  %s3114_s9 = inlined_call_operand.hbm [shape: f32[2,4], index: 9, kind: output, shape index: {}]  }
   0x1   :  { %15 = vsyncpa [#allocation6], 0 }
   0x2   :  { %16 = vsyncpa [#allocation4], 0  ;;  %s2714_s30 = smov [#allocation2]   ;;  %s2642_s13 = scalar_lea.hbm %s3106_s1, 256 }
   0x3   :  { %s24_s10 = sshll.u32 %s2714_s30, 4  ;;  %p2643_p0 = scmp.ne.s32.totalorder %s3106_s1, %s2642_s13  ;;  %s25_s10 = int_to_ptr.vmem [resolvable:$true] %s24_s10 }
   0x4   :  { %p2646_p1 = scmp.lt.u32.totalorder %s2642_s13, %s3106_s1 }
   0x6   :  { %p2648_p2 = pnand %p2646_p1, %p2643_p0 }
   0x8   :  { %2651 = shalt.err (!%p2648_p2)
}
   0x9   :  { %s2652_s18 = scalar_lea.vmem %s25_s10, 256  ;;  %p2657_p4 = scmp.lt.s32.totalorder %s25_s10, %s25_s10 }
   0xa   :  { %p2653_p3 = scmp.ne.s32.totalorder %s25_s10, %s2652_s18  ;;  %p2658_p5 = scmp.lt.s32.totalorder %s2652_s18, %s2652_s18 }
   0xc   :  { %p2659_p6 = por %p2658_p5, %p2657_p4 }
   0xe   :  { %p2660_p7 = pnand %p2659_p6, %p2653_p3 }
  0x10   :  { %2663 = shalt.err (!%p2660_p7)
}
  0x11   :  { %s2715_s19 = smov 128   ;;  %s2716_s20 = smov 8  }
  0x12   :  { %30 = dma.hbm_to_vmem [thread:$0]  %s3106_s1, 256, %s25_s10, [#allocation3], %s2715_s19, %s2715_s19, %s2716_s20  }
  0x13   :  { %s2717_s23 = smov [#allocation5]   ;;  %s2664_s27 = scalar_lea.hbm %s3113_s8, 16 }
  0x14   :  { %s49_s24 = sshll.u32 %s2717_s23, 4  ;;  %p2665_p8 = scmp.ne.s32.totalorder %s3113_s8, %s2664_s27  ;;  %s50_s24 = int_to_ptr.vmem [resolvable:$true] %s49_s24 }
  0x15   :  { %p2668_p9 = scmp.lt.u32.totalorder %s2664_s27, %s3113_s8 }
  0x17   :  { %p2670_p10 = pnand %p2668_p9, %p2665_p8 }
  0x19   :  { %2673 = shalt.err (!%p2670_p10)
}
  0x1a   :  { %s2674_s12 = scalar_lea.vmem %s50_s24, 16  ;;  %s2678_s1 = scalar_lea.vmem %s50_s24, 32 }
  0x1b   :  { %p2675_p11 = scmp.ne.s32.totalorder %s50_s24, %s2674_s12  ;;  %p2679_p12 = scmp.lt.s32.totalorder %s50_s24, %s50_s24 }
  0x1c   :  { %p2680_p13 = scmp.lt.s32.totalorder %s2678_s1, %s2674_s12 }
  0x1e   :  { %p2681_p0 = por %p2680_p13, %p2679_p12 }
  0x20   :  { %p2682_p1 = pnand %p2681_p0, %p2675_p11 }
  0x22   :  { %2685 = shalt.err (!%p2682_p1)
}
  0x23   :  { %52 = dma.hbm_to_vmem [thread:$0]  %s3113_s8, 16, %s50_s24, [#allocation6]  }
  0x24   :  { %2708 = dma.done.wait [#allocation3], 256  }
  0x25   :  { %2709 = vsyncadd [#allocation3], 4294967040 }
  0x26   :  { %2710 = dma.done.wait [#allocation6], 16  }
  0x27   :  { %2711 = vsyncadd [#allocation6], 4294967280  ;;  %v2718_v0 = vmov 0.0|0.0   ;;  %vm2719_vm0 = vmmov 0   ;;  %v2720_v1 = vmov 0.0   ;;  %vm74_vm1 = vcmask 130048  }
  0x28   :  { %2394 = vmatprep.subr.bf16.mxu1 %v2718_v0  ;;  %2200 = vmatprep.mubr.msk.f32.mxu1 %vm2719_vm0, %v2720_v1  ;;  %v61_v2 = vld [vmem:[#allocation2] sm:$0xff]  ;;  %v62_v3 = vld [vmem:[#allocation2 + $0x8] sm:$0xff]  ;;  %v65_v9 = vld [vmem:[%s3107_s2 + $0x10] sm:$0xff]  ;;  %s2721_s25 = smov 32   ;;  %vm156_vm2 = vcmask 261120   ;;  %vm999_vm3 = vcmask 1041408  }
  0x29   :  { %v63_v4 = vld [vmem:[%s3107_s2] sm:$0xff]  ;;  %v2390_v5 = vpack.c.bf16 %v62_v3, %v61_v2  ;;  %v64_v6 = vld [vmem:[%s3107_s2 + $0x8] sm:$0xff]  ;;  %v66_v10 = vld [vmem:[%s3107_s2 + $0x18] sm:$0xff]  ;;  %vm1001_vm4 = vcmask 1043456   ;;  %vm1003_vm5 = vcmask 1045504   ;;  %s2723_s2 = smov [#allocation7]  }
  0x2a   :  { %v59_v7 = vld [vmem:[%s3105_s0] sm:$0xff]  ;;  %v2810_v8 = vpack.c.bf16 %v64_v6, %v63_v4  ;;  %v60_v11 = vld [vmem:[%s3105_s0 + $0x8] sm:$0xff]  ;;  %v2823_v12 = vpack.c.bf16 %v66_v10, %v65_v9  ;;  %s2042_s26 = sshll.u32 %s2723_s2, 4  ;;  %vm2034_vm6 = vcmask 25600   ;;  %s2043_s26 = int_to_ptr.vmem [resolvable:$true] %s2042_s26 }
  0x2b   :  { %2189 = vmatprep.mubr.msk.f32.mxu0 %vm74_vm1, %v59_v7  ;;  %2391 = vmatprep.subr.bf16.mxu0 %v2390_v5  ;;  %v2052_v13 = vld [vmem:[%s3108_s3] ss:$0 sm:$0xff]  ;;  %s2722_s3 = smov 64   ;;  %p2691_p3 = scmp.lt.s32.totalorder %s2043_s26, %s2043_s26 }
  0x2c   :  { %2396 = vmatpush3.bf16.msra.mxu1 %v2810_v8  ;;  %2393 = vmatpush3.bf16.msra.mxu0 %v2390_v5 }
  0x2d   :  { %2397 = vmatprep.subr.bf16.mxu1 %v2718_v0  ;;  %2400 = vmatprep.subr.bf16.mxu0 %v2718_v0 }
  0x2f   :  { %2190 = vmatmul.mubr.msk.f32.vlgmr.msra.gmra.mrb[0].mxu0 %vm74_vm1, %v60_v11 }
  0x30   :  { %2399 = vmatpush3.bf16.msra.mxu1 %v2823_v12  ;;  %2402 = vmatpush3.bf16.msra.mxu0 %v2810_v8 }
  0x31   :  { %2403 = vmatprep.subr.bf16.mxu0 %v2718_v0  ;;  %2211 = vmatprep.mubr.msk.f32.mxu0 %vm2719_vm0, %v2720_v1 }
  0x32   :  { %2406 = vmatprep.subr.bf16.mxu1 %v2718_v0 }
  0x33   :  { %2201 = vmatmul.mubr.f32.vlgmr.msra.gmra.mrb[0].mxu1 %v2720_v1 }
  0x34   :  { %2405 = vmatpush3.bf16.msra.mxu0 %v2823_v12  ;;  %2408 = vmatpush3.bf16.msra.mxu1 %v2810_v8 }
  0x35   :  { %2409 = vmatprep.subr.bf16.mxu1 %v2718_v0  ;;  %2222 = vmatprep.mubr.msk.f32.mxu1 %vm2719_vm0, %v2720_v1 }
  0x36   :  { %2412 = vmatprep.subr.bf16.mxu0 %v2718_v0 }
  0x38   :  { %2411 = vmatpush3.bf16.msra.mxu1 %v2823_v12 }
  0x39   :  { %2418 = vmatprep.subr.bf16.mxu1 %v2718_v0 }
 0x102   :  { %v2191_v14 = vpop.f32.mrb[0].mxu0 }
 0x103   :  { %v2846_v15 = vadd.f32 %v2191_v14, %v2052_v13  ;;  %v147_v16 = vpop.f32.mrb[1].mxu0 }
 0x104   :  { %v2848_v17 = vadd.f32 %v2052_v13, %v147_v16 }
 0x106   :  { %v226_v18 = vpop.f32.mrb[0].mxu1 }
 0x107   :  { %v230_v19 = vadd.f32 %v226_v18, %v2848_v17  ;;  %v2202_v20 = vpop.f32.mrb[1].mxu1 }
 0x109   :  { %2514 = vtanh.f32 %v230_v19  ;;  %v2055_v22 = vmul.f32 -1.442695, %v230_v19 }
 0x10b   :  { %2516 = vpow2.f32 %v2055_v22 }
 0x113   :  { %v2515_v21 = vpop.eup %2514 }
 0x114   :  { %240 = vrot.lane.b32.xlu0 %v2515_v21, %s2721_s25 }
 0x115   :  { %v2517_v23 = vpop.eup %2516 }
 0x116   :  { %v234_v24 = vadd.f32 1.0, %v2517_v23 }
 0x118   :  { %2518 = vrcp.f32 %v234_v24 }
 0x122   :  { %v2519_v25 = vpop.eup %2518 }
 0x123   :  { %v238_v28 = vmul.f32 0.0, %v2519_v25 }
 0x186   :  { %v241_v26 = vpop.permute.xlu0 %240 }
 0x187   :  { %v243_v27 = vmul.f32 %v2519_v25, %v241_v26 }
 0x189   :  { %245 = vrot.lane.b32.xlu0 %v243_v27, %s2721_s25 }
 0x1fb   :  { %v246_v29 = vpop.permute.xlu0 %245 }
 0x1fc   :  { %v248_v30 = vadd.f32 %v246_v29, %v238_v28 }
 0x1fe   :  { %2520 = vtanh.f32 %v248_v30  ;;  %v342_v46 = vrot.slane %v248_v30, 6 }
 0x208   :  { %v2521_v31 = vpop.eup %2520 }
 0x209   :  { %251 = vrot.lane.b32.xlu1 %v2521_v31, %s2721_s25 }
 0x27b   :  { %v252_v32 = vpop.permute.xlu1 %251 }
 0x27c   :  { %v2854_v33 = vmul.f32 %v2519_v25, %v252_v32 }
 0x27e   :  { %256 = vrot.lane.b32.xlu1 %v2854_v33, %s2722_s3 }
 0x2f0   :  { %v257_v34 = vpop.permute.xlu1 %256 }
 0x2f1   :  { %2212 = vmatmul.mubr.msk.f32.vlgmr.msra.gmra.mrb[2].mxu0 %vm156_vm2, %v257_v34 }
 0x2f2   :  { %2414 = vmatpush3.bf16.msra.mxu0 %v2810_v8  ;;  %2233 = vmatprep.mubr.msk.f32.mxu0 %vm2719_vm0, %v2720_v1 }
 0x2f3   :  { %2415 = vmatprep.subr.bf16.mxu0 %v2718_v0 }
 0x2f6   :  { %2417 = vmatpush3.bf16.msra.mxu0 %v2823_v12 }
 0x2f7   :  { %2424 = vmatprep.subr.bf16.mxu0 %v2718_v0 }
 0x3c4   :  { %v326_v35 = vpop.f32.mrb[2].mxu0 }
 0x3c5   :  { %v331_v36 = vrot.slane %v326_v35, 6  ;;  %v2213_v37 = vpop.f32.mrb[3].mxu0 }
 0x3c7   :  { %v333_v38 = vadd.f32 %v331_v36, %v2848_v17 }
 0x3c9   :  { %2522 = vtanh.f32 %v333_v38  ;;  %v2057_v40 = vmul.f32 -1.442695, %v333_v38 }
 0x3cb   :  { %2524 = vpow2.f32 %v2057_v40 }
 0x3d3   :  { %v2523_v39 = vpop.eup %2522 }
 0x3d4   :  { %346 = vrot.lane.b32.xlu0 %v2523_v39, %s2721_s25 }
 0x3d5   :  { %v2525_v41 = vpop.eup %2524 }
 0x3d6   :  { %v337_v42 = vadd.f32 1.0, %v2525_v41 }
 0x3d8   :  { %2526 = vrcp.f32 %v337_v42 }
 0x3e2   :  { %v2527_v43 = vpop.eup %2526 }
 0x3e3   :  { %v344_v47 = vmul.f32 %v2527_v43, %v342_v46 }
 0x446   :  { %v347_v44 = vpop.permute.xlu0 %346 }
 0x447   :  { %v349_v45 = vmul.f32 %v2527_v43, %v347_v44 }
 0x449   :  { %351 = vrot.lane.b32.xlu1 %v349_v45, %s2721_s25 }
 0x4bb   :  { %v352_v48 = vpop.permute.xlu1 %351 }
 0x4bc   :  { %v354_v49 = vadd.f32 %v352_v48, %v344_v47 }
 0x4be   :  { %2528 = vtanh.f32 %v354_v49  ;;  %v449_v4 = vrot.slane %v354_v49, 6 }
 0x4c8   :  { %v2529_v50 = vpop.eup %2528 }
 0x4c9   :  { %357 = vrot.lane.b32.xlu0 %v2529_v50, %s2721_s25 }
 0x53b   :  { %v358_v51 = vpop.permute.xlu0 %357 }
 0x53c   :  { %v360_v52 = vmul.f32 %v2527_v43, %v358_v51 }
 0x53e   :  { %v362_v53 = vrot.slane %v360_v52, 2  ;;  %v1000_v13 = vsel %vm999_vm3, %v2854_v33, %v360_v52 }
 0x540   :  { %363 = vrot.lane.b32.xlu1 %v362_v53, %s2722_s3 }
 0x5b2   :  { %v364_v54 = vpop.permute.xlu1 %363 }
 0x5b3   :  { %2223 = vmatmul.mubr.msk.f32.vlgmr.msra.gmra.mrb[2].mxu1 %vm156_vm2, %v364_v54 }
 0x5b4   :  { %2420 = vmatpush3.bf16.msra.mxu1 %v2810_v8  ;;  %2244 = vmatprep.mubr.msk.f32.mxu1 %vm2719_vm0, %v2720_v1 }
 0x5b5   :  { %2421 = vmatprep.subr.bf16.mxu1 %v2718_v0 }
 0x5b8   :  { %2423 = vmatpush3.bf16.msra.mxu1 %v2823_v12 }
 0x5b9   :  { %2430 = vmatprep.subr.bf16.mxu1 %v2718_v0 }
 0x686   :  { %v433_v55 = vpop.f32.mrb[2].mxu1 }
 0x687   :  { %v438_v56 = vrot.slane %v433_v55, 4  ;;  %v2224_v57 = vpop.f32.mrb[3].mxu1 }
 0x689   :  { %v440_v58 = vadd.f32 %v438_v56, %v2848_v17 }
 0x68b   :  { %2530 = vtanh.f32 %v440_v58  ;;  %v2059_v60 = vmul.f32 -1.442695, %v440_v58 }
 0x68d   :  { %2532 = vpow2.f32 %v2059_v60 }
 0x695   :  { %v2531_v59 = vpop.eup %2530 }
 0x696   :  { %453 = vrot.lane.b32.xlu0 %v2531_v59, %s2721_s25 }
 0x697   :  { %v2533_v61 = vpop.eup %2532 }
 0x698   :  { %v444_v62 = vadd.f32 1.0, %v2533_v61 }
 0x69a   :  { %2534 = vrcp.f32 %v444_v62 }
 0x6a4   :  { %v2535_v63 = vpop.eup %2534 }
 0x6a5   :  { %v451_v5 = vmul.f32 %v2535_v63, %v449_v4 }
 0x708   :  { %v454_v2 = vpop.permute.xlu0 %453 }
 0x709   :  { %v456_v3 = vmul.f32 %v2535_v63, %v454_v2 }
 0x70b   :  { %458 = vrot.lane.b32.xlu1 %v456_v3, %s2721_s25 }
 0x77d   :  { %v459_v6 = vpop.permute.xlu1 %458 }
 0x77e   :  { %v461_v7 = vadd.f32 %v459_v6, %v451_v5 }
 0x780   :  { %2536 = vtanh.f32 %v461_v7  ;;  %v556_v30 = vrot.slane %v461_v7, 6 }
 0x78a   :  { %v2537_v9 = vpop.eup %2536 }
 0x78b   :  { %464 = vrot.lane.b32.xlu0 %v2537_v9, %s2721_s25 }
 0x7fd   :  { %v465_v10 = vpop.permute.xlu0 %464 }
 0x7fe   :  { %v467_v11 = vmul.f32 %v2535_v63, %v465_v10 }
 0x800   :  { %v469_v14 = vrot.slane %v467_v11, 4  ;;  %v1002_v16 = vsel %vm1001_vm4, %v1000_v13, %v467_v11 }
 0x802   :  { %470 = vrot.lane.b32.xlu1 %v469_v14, %s2722_s3 }
 0x874   :  { %v471_v18 = vpop.permute.xlu1 %470 }
 0x875   :  { %2234 = vmatmul.mubr.msk.f32.vlgmr.msra.gmra.mrb[4].mxu0 %vm156_vm2, %v471_v18 }
 0x876   :  { %2426 = vmatpush3.bf16.msra.mxu0 %v2810_v8  ;;  %2255 = vmatprep.mubr.msk.f32.mxu0 %vm2719_vm0, %v2720_v1 }
 0x877   :  { %2427 = vmatprep.subr.bf16.mxu0 %v2718_v0 }
 0x87a   :  { %2429 = vmatpush3.bf16.msra.mxu0 %v2823_v12 }
 0x87b   :  { %2436 = vmatprep.subr.bf16.mxu0 %v2718_v0 }
 0x948   :  { %v540_v19 = vpop.f32.mrb[4].mxu0 }
 0x949   :  { %v545_v20 = vrot.slane %v540_v19, 2  ;;  %v2235_v21 = vpop.f32.mrb[5].mxu0 }
 0x94b   :  { %v547_v22 = vadd.f32 %v545_v20, %v2848_v17 }
 0x94d   :  { %2538 = vtanh.f32 %v547_v22  ;;  %v2061_v24 = vmul.f32 -1.442695, %v547_v22 }
 0x94f   :  { %2540 = vpow2.f32 %v2061_v24 }
 0x957   :  { %v2539_v23 = vpop.eup %2538 }
 0x958   :  { %560 = vrot.lane.b32.xlu0 %v2539_v23, %s2721_s25 }
 0x959   :  { %v2541_v25 = vpop.eup %2540 }
 0x95a   :  { %v551_v26 = vadd.f32 1.0, %v2541_v25 }
 0x95c   :  { %2542 = vrcp.f32 %v551_v26 }
 0x966   :  { %v2543_v27 = vpop.eup %2542 }
 0x967   :  { %v558_v31 = vmul.f32 %v2543_v27, %v556_v30 }
 0x9ca   :  { %v561_v28 = vpop.permute.xlu0 %560 }
 0x9cb   :  { %v563_v29 = vmul.f32 %v2543_v27, %v561_v28 }
 0x9cd   :  { %565 = vrot.lane.b32.xlu1 %v563_v29, %s2721_s25 }
 0xa3f   :  { %v566_v32 = vpop.permute.xlu1 %565 }
 0xa40   :  { %v568_v33 = vadd.f32 %v566_v32, %v558_v31 }
 0xa42   :  { %2544 = vtanh.f32 %v568_v33  ;;  %v660_v49 = vrot.slane %v568_v33, 6 }
 0xa4c   :  { %v2545_v17 = vpop.eup %2544 }
 0xa4d   :  { %571 = vrot.lane.b32.xlu0 %v2545_v17, %s2721_s25 }
 0xabf   :  { %v572_v34 = vpop.permute.xlu0 %571 }
 0xac0   :  { %v574_v35 = vmul.f32 %v2543_v27, %v572_v34 }
 0xac2   :  { %v576_v36 = vrot.slane %v574_v35, 6  ;;  %v2897_v37 = vsel %vm1003_vm5, %v1002_v16, %v574_v35 }
 0xac4   :  { %577 = vrot.lane.b32.xlu1 %v576_v36, %s2722_s3 }
 0xb36   :  { %v578_v38 = vpop.permute.xlu1 %577 }
 0xb37   :  { %2245 = vmatmul.mubr.msk.f32.vlgmr.msra.gmra.mrb[4].mxu1 %vm156_vm2, %v578_v38 }
 0xb38   :  { %2432 = vmatpush3.bf16.msra.mxu1 %v2810_v8  ;;  %2266 = vmatprep.mubr.msk.f32.mxu1 %vm2719_vm0, %v2720_v1 }
 0xb39   :  { %2433 = vmatprep.subr.bf16.mxu1 %v2718_v0 }
 0xb3c   :  { %2435 = vmatpush3.bf16.msra.mxu1 %v2823_v12 }
 0xc0a   :  { %v647_v39 = vpop.f32.mrb[4].mxu1 }
 0xc0b   :  { %v651_v40 = vadd.f32 %v647_v39, %v2846_v15  ;;  %v2246_v41 = vpop.f32.mrb[5].mxu1 }
 0xc0d   :  { %2546 = vtanh.f32 %v651_v40  ;;  %v2063_v43 = vmul.f32 -1.442695, %v651_v40 }
 0xc0f   :  { %2548 = vpow2.f32 %v2063_v43 }
 0xc17   :  { %v2547_v42 = vpop.eup %2546 }
 0xc18   :  { %664 = vrot.lane.b32.xlu0 %v2547_v42, %s2721_s25 }
 0xc19   :  { %v2549_v44 = vpop.eup %2548 }
 0xc1a   :  { %v655_v45 = vadd.f32 1.0, %v2549_v44 }
 0xc1c   :  { %2550 = vrcp.f32 %v655_v45 }
 0xc26   :  { %v2551_v46 = vpop.eup %2550 }
 0xc27   :  { %v662_v50 = vmul.f32 %v2551_v46, %v660_v49 }
 0xc8a   :  { %v665_v47 = vpop.permute.xlu0 %664 }
 0xc8b   :  { %v667_v48 = vmul.f32 %v2551_v46, %v665_v47 }
 0xc8d   :  { %669 = vrot.lane.b32.xlu1 %v667_v48, %s2721_s25 }
 0xcff   :  { %v670_v51 = vpop.permute.xlu1 %669 }
 0xd00   :  { %v672_v52 = vadd.f32 %v670_v51, %v662_v50 }
 0xd02   :  { %2552 = vtanh.f32 %v672_v52 }
 0xd0c   :  { %v2553_v53 = vpop.eup %2552 }
 0xd0d   :  { %675 = vrot.lane.b32.xlu0 %v2553_v53, %s2721_s25 }
 0xd7f   :  { %v676_v54 = vpop.permute.xlu0 %675 }
 0xd80   :  { %v2910_v55 = vmul.f32 %v2551_v46, %v676_v54  ;;  %v1008_v54 = vld [vmem:[%s3109_s4] sm:$0xff] }
 0xd82   :  { %680 = vrot.lane.b32.xlu1 %v2910_v55, %s2722_s3 }
 0xdf4   :  { %v681_v56 = vpop.permute.xlu1 %680 }
 0xdf5   :  { %2256 = vmatmul.mubr.msk.f32.vlgmr.msra.gmra.mrb[6].mxu0 %vm156_vm2, %v681_v56  ;;  %v1012_v56 = vld [vmem:[%s3110_s5] sm:$0xff] }
 0xdf6   :  { %2438 = vmatpush3.bf16.msra.mxu0 %v2810_v8  ;;  %2277 = vmatprep.mubr.msk.f32.mxu0 %vm2719_vm0, %v2720_v1 }
 0xdf7   :  { %2439 = vmatprep.subr.bf16.mxu0 %v2718_v0 }
 0xdfa   :  { %2441 = vmatpush3.bf16.msra.mxu0 %v2823_v12  ;;  %v766_v12 = vrot.slane %v672_v52, 6 }
 0xdfb   :  { %2450 = vmatprep.subr.bf16.mxu0 %v2718_v0 }
 0xec8   :  { %v750_v57 = vpop.f32.mrb[6].mxu0 }
 0xec9   :  { %v755_v58 = vrot.slane %v750_v57, 6  ;;  %v2257_v59 = vpop.f32.mrb[7].mxu0  ;;  %v1013_v57 = vld [vmem:[%s3110_s5 + $0x8] sm:$0xff] }
 0xeca   :  { %v1011_v59 = vld [vmem:[%s3109_s4 + $0x18] sm:$0xff] }
 0xecb   :  { %v757_v60 = vadd.f32 %v755_v58, %v2846_v15  ;;  %v1010_v58 = vld [vmem:[%s3109_s4 + $0x10] sm:$0xff] }
 0xecd   :  { %2554 = vtanh.f32 %v757_v60  ;;  %v2065_v62 = vmul.f32 -1.442695, %v757_v60  ;;  %v2962_v60 = vpack.c.bf16 %v1013_v57, %v1012_v56 }
 0xecf   :  { %2556 = vpow2.f32 %v2065_v62  ;;  %v1014_v62 = vld [vmem:[%s3110_s5 + $0x10] sm:$0xff] }
 0xed7   :  { %v2555_v61 = vpop.eup %2554 }
 0xed8   :  { %770 = vrot.lane.b32.xlu0 %v2555_v61, %s2721_s25  ;;  %v2446_v61 = vpack.c.bf16 %v1011_v59, %v1010_v58 }
 0xed9   :  { %v2557_v8 = vpop.eup %2556 }
 0xeda   :  { %v761_v63 = vadd.f32 1.0, %v2557_v8  ;;  %v1015_v8 = vld [vmem:[%s3110_s5 + $0x18] sm:$0xff] }
 0xedc   :  { %2558 = vrcp.f32 %v761_v63  ;;  %v2971_v63 = vpack.c.bf16 %v1015_v8, %v1014_v62 }
 0xee6   :  { %v2559_v2 = vpop.eup %2558 }
 0xee7   :  { %v768_v5 = vmul.f32 %v2559_v2, %v766_v12 }
 0xf4a   :  { %v771_v3 = vpop.permute.xlu0 %770 }
 0xf4b   :  { %v773_v4 = vmul.f32 %v2559_v2, %v771_v3 }
 0xf4d   :  { %775 = vrot.lane.b32.xlu1 %v773_v4, %s2721_s25 }
 0xfbf   :  { %v776_v6 = vpop.permute.xlu1 %775 }
 0xfc0   :  { %v778_v7 = vadd.f32 %v776_v6, %v768_v5 }
 0xfc2   :  { %2560 = vtanh.f32 %v778_v7  ;;  %v873_v28 = vrot.slane %v778_v7, 6 }
 0xfcc   :  { %v2561_v9 = vpop.eup %2560 }
 0xfcd   :  { %781 = vrot.lane.b32.xlu0 %v2561_v9, %s2721_s25  ;;  %v2070_v9 = vld [vmem:[%s3111_s6] ss:$0 sm:$0xff] }
0x103f   :  { %v782_v10 = vpop.permute.xlu0 %781 }
0x1040   :  { %v784_v11 = vmul.f32 %v2559_v2, %v782_v10 }
0x1042   :  { %v786_v13 = vrot.slane %v784_v11, 2  ;;  %v1005_v34 = vsel %vm999_vm3, %v2910_v55, %v784_v11  ;;  %v1009_v55 = vld [vmem:[%s3109_s4 + $0x8] sm:$0xff] }
0x1044   :  { %787 = vrot.lane.b32.xlu1 %v786_v13, %s2722_s3 }
0x10b6   :  { %v788_v14 = vpop.permute.xlu1 %787 }
0x10b7   :  { %2267 = vmatmul.mubr.msk.f32.vlgmr.msra.gmra.mrb[6].mxu1 %vm156_vm2, %v788_v14 }
0x118a   :  { %v857_v16 = vpop.f32.mrb[6].mxu1 }
0x118b   :  { %v862_v18 = vrot.slane %v857_v16, 4  ;;  %v2268_v19 = vpop.f32.mrb[7].mxu1 }
0x118d   :  { %v864_v20 = vadd.f32 %v862_v18, %v2846_v15 }
0x118f   :  { %2562 = vtanh.f32 %v864_v20  ;;  %v2067_v22 = vmul.f32 -1.442695, %v864_v20 }
0x1191   :  { %2564 = vpow2.f32 %v2067_v22 }
0x1199   :  { %v2563_v21 = vpop.eup %2562 }
0x119a   :  { %877 = vrot.lane.b32.xlu0 %v2563_v21, %s2721_s25 }
0x119b   :  { %v2565_v23 = vpop.eup %2564 }
0x119c   :  { %v868_v24 = vadd.f32 1.0, %v2565_v23 }
0x119e   :  { %2566 = vrcp.f32 %v868_v24 }
0x11a8   :  { %v2567_v25 = vpop.eup %2566 }
0x11a9   :  { %v875_v29 = vmul.f32 %v2567_v25, %v873_v28 }
0x120c   :  { %v878_v26 = vpop.permute.xlu0 %877 }
0x120d   :  { %v880_v27 = vmul.f32 %v2567_v25, %v878_v26 }
0x120f   :  { %882 = vrot.lane.b32.xlu1 %v880_v27, %s2721_s25 }
0x1281   :  { %v883_v30 = vpop.permute.xlu1 %882 }
0x1282   :  { %v885_v31 = vadd.f32 %v883_v30, %v875_v29 }
0x1284   :  { %2568 = vtanh.f32 %v885_v31  ;;  %v980_v50 = vrot.slane %v885_v31, 6 }
0x128e   :  { %v2569_v32 = vpop.eup %2568 }
0x128f   :  { %888 = vrot.lane.b32.xlu0 %v2569_v32, %s2721_s25 }
0x1301   :  { %v889_v33 = vpop.permute.xlu0 %888 }
0x1302   :  { %v891_v17 = vmul.f32 %v2567_v25, %v889_v33 }
0x1304   :  { %v893_v35 = vrot.slane %v891_v17, 4  ;;  %v1006_v36 = vsel %vm1001_vm4, %v1005_v34, %v891_v17 }
0x1306   :  { %894 = vrot.lane.b32.xlu1 %v893_v35, %s2722_s3 }
0x1378   :  { %v895_v38 = vpop.permute.xlu1 %894 }
0x1379   :  { %2278 = vmatmul.mubr.msk.f32.vlgmr.msra.gmra.mrb[8].mxu0 %vm156_vm2, %v895_v38 }
0x137a   :  { %2299 = vmatprep.mubr.msk.f32.mxu0 %vm2719_vm0, %v2720_v1  ;;  %2452 = vmatpush3.bf16.msra.mxu0 %v2962_v60 }
0x137b   :  { %2453 = vmatprep.subr.bf16.mxu0 %v2718_v0 }
0x137e   :  { %2455 = vmatpush3.bf16.msra.mxu0 %v2971_v63 }
0x137f   :  { %2462 = vmatprep.subr.bf16.mxu0 %v2718_v0 }
0x1381   :  { %2300 = vmatmul.mubr.f32.vlgmr.msra.gmra.mrb[10].mxu0 %v2720_v1 }
0x1382   :  { %2464 = vmatpush3.bf16.msra.mxu0 %v2962_v60  ;;  %2321 = vmatprep.mubr.msk.f32.mxu0 %vm2719_vm0, %v2720_v1 }
0x1383   :  { %2465 = vmatprep.subr.bf16.mxu0 %v2718_v0 }
0x1386   :  { %2467 = vmatpush3.bf16.msra.mxu0 %v2971_v63 }
0x1387   :  { %2474 = vmatprep.subr.bf16.mxu0 %v2718_v0 }
0x144c   :  { %v964_v39 = vpop.f32.mrb[8].mxu0 }
0x144d   :  { %v969_v40 = vrot.slane %v964_v39, 2  ;;  %v2279_v41 = vpop.f32.mrb[9].mxu0 }
0x144f   :  { %v971_v42 = vadd.f32 %v969_v40, %v2846_v15 }
0x1451   :  { %2570 = vtanh.f32 %v971_v42  ;;  %v2069_v44 = vmul.f32 -1.442695, %v971_v42 }
0x1453   :  { %2572 = vpow2.f32 %v2069_v44 }
0x1454   :  { %v1174_v6 = vpop.f32.mrb[10].mxu0 }
0x1455   :  { %v2301_v7 = vpop.f32.mrb[11].mxu0 }
0x145b   :  { %v2571_v43 = vpop.eup %2570 }
0x145c   :  { %984 = vrot.lane.b32.xlu0 %v2571_v43, %s2721_s25 }
0x145d   :  { %v2573_v45 = vpop.eup %2572 }
0x145e   :  { %v975_v46 = vadd.f32 1.0, %v2573_v45 }
0x1460   :  { %2574 = vrcp.f32 %v975_v46 }
0x146a   :  { %v2575_v47 = vpop.eup %2574 }
0x146b   :  { %v982_v51 = vmul.f32 %v2575_v47, %v980_v50 }
0x14ce   :  { %v985_v48 = vpop.permute.xlu0 %984 }
0x14cf   :  { %v987_v49 = vmul.f32 %v2575_v47, %v985_v48 }
0x14d1   :  { %989 = vrot.lane.b32.xlu1 %v987_v49, %s2721_s25 }
0x14d5   :  { %1025 = vrot.lane.b32.xlu1 %v2897_v37, %s2722_s3  ;;  %v2442_v37 = vpack.c.bf16 %v1009_v55, %v1008_v54 }
0x14d7   :  { %2443 = vmatprep.subr.bf16.mxu1 %v2442_v37 }
0x14d8   :  { %2445 = vmatpush3.bf16.msra.mxu1 %v2442_v37 }
0x14d9   :  { %2447 = vmatprep.subr.bf16.mxu1 %v2446_v61 }
0x14dc   :  { %2449 = vmatpush3.bf16.msra.mxu1 %v2446_v61 }
0x14dd   :  { %2456 = vmatprep.subr.bf16.mxu1 %v2718_v0 }
0x1543   :  { %v990_v15 = vpop.permute.xlu1 %989 }
0x1544   :  { %v992_v52 = vadd.f32 %v990_v15, %v982_v51 }
0x1546   :  { %2576 = vtanh.f32 %v992_v52 }
0x1547   :  { %v1026_v53 = vpop.permute.xlu1 %1025 }
0x1548   :  { %2288 = vmatprep.mubr.msk.f32.mxu1 %vm156_vm2, %v1026_v53 }
0x1550   :  { %v2577_v2 = vpop.eup %2576 }
0x1551   :  { %995 = vrot.lane.b32.xlu0 %v2577_v2, %s2721_s25 }
0x15c3   :  { %v996_v3 = vpop.permute.xlu0 %995 }
0x15c4   :  { %v998_v4 = vmul.f32 %v2575_v47, %v996_v3 }
0x15c6   :  { %v1007_v12 = vsel %vm1003_vm5, %v1006_v36, %v998_v4 }
0x15c7   :  { %1027 = vrot.lane.b32.xlu0 %v1007_v12, %s2722_s3 }
0x1639   :  { %v1028_v5 = vpop.permute.xlu0 %1027 }
0x163a   :  { %2289 = vmatmul.mubr.msk.f32.vlgmr.msra.gmra.mrb[8].mxu1 %vm156_vm2, %v1028_v5 }
0x163b   :  { %2458 = vmatpush3.bf16.msra.mxu1 %v2962_v60  ;;  %2310 = vmatprep.mubr.msk.f32.mxu1 %vm2719_vm0, %v2720_v1 }
0x163c   :  { %2459 = vmatprep.subr.bf16.mxu1 %v2718_v0 }
0x163f   :  { %2461 = vmatpush3.bf16.msra.mxu1 %v2971_v63 }
0x1640   :  { %2468 = vmatprep.subr.bf16.mxu1 %v2718_v0 }
0x170d   :  { %v2290_v10 = vpop.f32.mrb[8].mxu1 }
0x170e   :  { %v2997_v11 = vadd.f32 %v2290_v10, %v2070_v9  ;;  %v1099_v13 = vpop.f32.mrb[9].mxu1 }
0x170f   :  { %v2999_v14 = vadd.f32 %v2070_v9, %v1099_v13 }
0x1711   :  { %v1178_v16 = vadd.f32 %v1174_v6, %v2999_v14 }
0x1713   :  { %2578 = vtanh.f32 %v1178_v16  ;;  %v2073_v19 = vmul.f32 -1.442695, %v1178_v16 }
0x1715   :  { %2580 = vpow2.f32 %v2073_v19 }
0x171d   :  { %v2579_v18 = vpop.eup %2578 }
0x171e   :  { %1188 = vrot.lane.b32.xlu1 %v2579_v18, %s2721_s25 }
0x171f   :  { %v2581_v20 = vpop.eup %2580 }
0x1720   :  { %v1182_v21 = vadd.f32 1.0, %v2581_v20 }
0x1722   :  { %2582 = vrcp.f32 %v1182_v21 }
0x172c   :  { %v2583_v22 = vpop.eup %2582 }
0x172d   :  { %v1186_v25 = vmul.f32 0.0, %v2583_v22 }
0x1790   :  { %v1189_v23 = vpop.permute.xlu1 %1188 }
0x1791   :  { %v1191_v24 = vmul.f32 %v2583_v22, %v1189_v23 }
0x1793   :  { %1193 = vrot.lane.b32.xlu0 %v1191_v24, %s2721_s25 }
0x1805   :  { %v1194_v26 = vpop.permute.xlu0 %1193 }
0x1806   :  { %v1196_v27 = vadd.f32 %v1194_v26, %v1186_v25 }
0x1808   :  { %2584 = vtanh.f32 %v1196_v27  ;;  %v1290_v43 = vrot.slane %v1196_v27, 6 }
0x1812   :  { %v2585_v28 = vpop.eup %2584 }
0x1813   :  { %1199 = vrot.lane.b32.xlu1 %v2585_v28, %s2721_s25 }
0x1885   :  { %v1200_v29 = vpop.permute.xlu1 %1199 }
0x1886   :  { %v1202_v30 = vmul.f32 %v2583_v22, %v1200_v29 }
0x1888   :  { %1204 = vrot.lane.b32.xlu0 %v1202_v30, %s2722_s3 }
0x18fa   :  { %v1205_v31 = vpop.permute.xlu0 %1204 }
0x18fb   :  { %2311 = vmatmul.mubr.msk.f32.vlgmr.msra.gmra.mrb[10].mxu1 %vm156_vm2, %v1205_v31 }
0x18fc   :  { %2470 = vmatpush3.bf16.msra.mxu1 %v2962_v60  ;;  %2332 = vmatprep.mubr.msk.f32.mxu1 %vm2719_vm0, %v2720_v1 }
0x18fd   :  { %2471 = vmatprep.subr.bf16.mxu1 %v2718_v0 }
0x1900   :  { %2473 = vmatpush3.bf16.msra.mxu1 %v2971_v63 }
0x1901   :  { %2480 = vmatprep.subr.bf16.mxu1 %v2718_v0 }
0x19ce   :  { %v1274_v32 = vpop.f32.mrb[10].mxu1 }
0x19cf   :  { %v1279_v33 = vrot.slane %v1274_v32, 6  ;;  %v2312_v17 = vpop.f32.mrb[11].mxu1 }
0x19d1   :  { %v1281_v34 = vadd.f32 %v1279_v33, %v2999_v14 }
0x19d3   :  { %2586 = vtanh.f32 %v1281_v34  ;;  %v2075_v36 = vmul.f32 -1.442695, %v1281_v34 }
0x19d5   :  { %2588 = vpow2.f32 %v2075_v36 }
0x19dd   :  { %v2587_v35 = vpop.eup %2586 }
0x19de   :  { %1294 = vrot.lane.b32.xlu1 %v2587_v35, %s2721_s25 }
0x19df   :  { %v2589_v38 = vpop.eup %2588 }
0x19e0   :  { %v1285_v39 = vadd.f32 1.0, %v2589_v38 }
0x19e2   :  { %2590 = vrcp.f32 %v1285_v39 }
0x19ec   :  { %v2591_v40 = vpop.eup %2590 }
0x19ed   :  { %v1292_v44 = vmul.f32 %v2591_v40, %v1290_v43 }
0x1a50   :  { %v1295_v41 = vpop.permute.xlu1 %1294 }
0x1a51   :  { %v1297_v42 = vmul.f32 %v2591_v40, %v1295_v41 }
0x1a53   :  { %1299 = vrot.lane.b32.xlu0 %v1297_v42, %s2721_s25 }
0x1ac5   :  { %v1300_v45 = vpop.permute.xlu0 %1299 }
0x1ac6   :  { %v1302_v46 = vadd.f32 %v1300_v45, %v1292_v44 }
0x1ac8   :  { %2592 = vtanh.f32 %v1302_v46  ;;  %v1397_v62 = vrot.slane %v1302_v46, 6 }
0x1ad2   :  { %v2593_v47 = vpop.eup %2592 }
0x1ad3   :  { %1305 = vrot.lane.b32.xlu1 %v2593_v47, %s2721_s25 }
0x1b45   :  { %v1306_v48 = vpop.permute.xlu1 %1305 }
0x1b46   :  { %v1308_v49 = vmul.f32 %v2591_v40, %v1306_v48 }
0x1b48   :  { %v1310_v50 = vrot.slane %v1308_v49, 2 }
0x1b4a   :  { %1311 = vrot.lane.b32.xlu0 %v1310_v50, %s2722_s3 }
0x1bbc   :  { %v1312_v51 = vpop.permute.xlu0 %1311 }
0x1bbd   :  { %2322 = vmatmul.mubr.msk.f32.vlgmr.msra.gmra.mrb[12].mxu0 %vm156_vm2, %v1312_v51 }
0x1bbe   :  { %2476 = vmatpush3.bf16.msra.mxu0 %v2962_v60  ;;  %2343 = vmatprep.mubr.msk.f32.mxu0 %vm2719_vm0, %v2720_v1 }
0x1bbf   :  { %2477 = vmatprep.subr.bf16.mxu0 %v2718_v0 }
0x1bc2   :  { %2479 = vmatpush3.bf16.msra.mxu0 %v2971_v63 }
0x1bc3   :  { %2486 = vmatprep.subr.bf16.mxu0 %v2718_v0 }
0x1c90   :  { %v1381_v15 = vpop.f32.mrb[12].mxu0 }
0x1c91   :  { %v1386_v52 = vrot.slane %v1381_v15, 4  ;;  %v2323_v53 = vpop.f32.mrb[13].mxu0 }
0x1c93   :  { %v1388_v54 = vadd.f32 %v1386_v52, %v2999_v14 }
0x1c95   :  { %2594 = vtanh.f32 %v1388_v54  ;;  %v2077_v56 = vmul.f32 -1.442695, %v1388_v54 }
0x1c97   :  { %2596 = vpow2.f32 %v2077_v56 }
0x1c9f   :  { %v2595_v55 = vpop.eup %2594 }
0x1ca0   :  { %1401 = vrot.lane.b32.xlu1 %v2595_v55, %s2721_s25 }
0x1ca1   :  { %v2597_v37 = vpop.eup %2596 }
0x1ca2   :  { %v1392_v57 = vadd.f32 1.0, %v2597_v37 }
0x1ca4   :  { %2598 = vrcp.f32 %v1392_v57 }
0x1cae   :  { %v2599_v58 = vpop.eup %2598 }
0x1caf   :  { %v1399_v8 = vmul.f32 %v2599_v58, %v1397_v62 }
0x1d12   :  { %v1402_v59 = vpop.permute.xlu1 %1401 }
0x1d13   :  { %v1404_v61 = vmul.f32 %v2599_v58, %v1402_v59 }
0x1d15   :  { %1406 = vrot.lane.b32.xlu0 %v1404_v61, %s2721_s25 }
0x1d87   :  { %v1407_v2 = vpop.permute.xlu0 %1406 }
0x1d88   :  { %v1409_v3 = vadd.f32 %v1407_v2, %v1399_v8 }
0x1d8a   :  { %2600 = vtanh.f32 %v1409_v3  ;;  %v1504_v25 = vrot.slane %v1409_v3, 6 }
0x1d94   :  { %v2601_v4 = vpop.eup %2600 }
0x1d95   :  { %1412 = vrot.lane.b32.xlu1 %v2601_v4, %s2721_s25 }
0x1e07   :  { %v1413_v12 = vpop.permute.xlu1 %1412 }
0x1e08   :  { %v1415_v5 = vmul.f32 %v2599_v58, %v1413_v12 }
0x1e0a   :  { %v1417_v6 = vrot.slane %v1415_v5, 4 }
0x1e0c   :  { %1418 = vrot.lane.b32.xlu0 %v1417_v6, %s2722_s3 }
0x1e7e   :  { %v1419_v7 = vpop.permute.xlu0 %1418 }
0x1e7f   :  { %2333 = vmatmul.mubr.msk.f32.vlgmr.msra.gmra.mrb[12].mxu1 %vm156_vm2, %v1419_v7 }
0x1e80   :  { %2482 = vmatpush3.bf16.msra.mxu1 %v2962_v60  ;;  %2354 = vmatprep.mubr.msk.f32.mxu1 %vm2719_vm0, %v2720_v1 }
0x1e81   :  { %2483 = vmatprep.subr.bf16.mxu1 %v2718_v0 }
0x1e84   :  { %2485 = vmatpush3.bf16.msra.mxu1 %v2971_v63 }
0x1e85   :  { %2492 = vmatprep.subr.bf16.mxu1 %v2718_v0 }
0x1f52   :  { %v1488_v9 = vpop.f32.mrb[12].mxu1 }
0x1f53   :  { %v1493_v10 = vrot.slane %v1488_v9, 2  ;;  %v2334_v13 = vpop.f32.mrb[13].mxu1 }
0x1f55   :  { %v1495_v16 = vadd.f32 %v1493_v10, %v2999_v14 }
0x1f57   :  { %2602 = vtanh.f32 %v1495_v16  ;;  %v2079_v19 = vmul.f32 -1.442695, %v1495_v16 }
0x1f59   :  { %2604 = vpow2.f32 %v2079_v19 }
0x1f61   :  { %v2603_v18 = vpop.eup %2602 }
0x1f62   :  { %1508 = vrot.lane.b32.xlu1 %v2603_v18, %s2721_s25 }
0x1f63   :  { %v2605_v20 = vpop.eup %2604 }
0x1f64   :  { %v1499_v21 = vadd.f32 1.0, %v2605_v20 }
0x1f66   :  { %2606 = vrcp.f32 %v1499_v21 }
0x1f70   :  { %v2607_v22 = vpop.eup %2606 }
0x1f71   :  { %v1506_v26 = vmul.f32 %v2607_v22, %v1504_v25 }
0x1fd4   :  { %v1509_v23 = vpop.permute.xlu1 %1508 }
0x1fd5   :  { %v1511_v24 = vmul.f32 %v2607_v22, %v1509_v23 }
0x1fd7   :  { %1513 = vrot.lane.b32.xlu0 %v1511_v24, %s2721_s25 }
0x2049   :  { %v1514_v27 = vpop.permute.xlu0 %1513 }
0x204a   :  { %v1516_v28 = vadd.f32 %v1514_v27, %v1506_v26 }
0x204c   :  { %2608 = vtanh.f32 %v1516_v28  ;;  %v1608_v43 = vrot.slane %v1516_v28, 6 }
0x2056   :  { %v2609_v14 = vpop.eup %2608 }
0x2057   :  { %1519 = vrot.lane.b32.xlu1 %v2609_v14, %s2721_s25 }
0x20c9   :  { %v1520_v29 = vpop.permute.xlu1 %1519 }
0x20ca   :  { %v1522_v30 = vmul.f32 %v2607_v22, %v1520_v29 }
0x20cc   :  { %v1524_v31 = vrot.slane %v1522_v30, 6 }
0x20ce   :  { %1525 = vrot.lane.b32.xlu0 %v1524_v31, %s2722_s3 }
0x2140   :  { %v1526_v32 = vpop.permute.xlu0 %1525 }
0x2141   :  { %2344 = vmatmul.mubr.msk.f32.vlgmr.msra.gmra.mrb[14].mxu0 %vm156_vm2, %v1526_v32 }
0x2142   :  { %2488 = vmatpush3.bf16.msra.mxu0 %v2962_v60  ;;  %2365 = vmatprep.mubr.msk.f32.mxu0 %vm2719_vm0, %v2720_v1 }
0x2143   :  { %2489 = vmatprep.subr.bf16.mxu0 %v2718_v0 }
0x2146   :  { %2491 = vmatpush3.bf16.msra.mxu0 %v2971_v63 }
0x2147   :  { %2498 = vmatprep.subr.bf16.mxu0 %v2718_v0 }
0x2214   :  { %v1595_v33 = vpop.f32.mrb[14].mxu0 }
0x2215   :  { %v1599_v17 = vadd.f32 %v1595_v33, %v2997_v11  ;;  %v2345_v34 = vpop.f32.mrb[15].mxu0 }
0x2217   :  { %2610 = vtanh.f32 %v1599_v17  ;;  %v2081_v36 = vmul.f32 -1.442695, %v1599_v17 }
0x2219   :  { %2612 = vpow2.f32 %v2081_v36 }
0x2221   :  { %v2611_v35 = vpop.eup %2610 }
0x2222   :  { %1612 = vrot.lane.b32.xlu1 %v2611_v35, %s2721_s25 }
0x2223   :  { %v2613_v38 = vpop.eup %2612 }
0x2224   :  { %v1603_v39 = vadd.f32 1.0, %v2613_v38 }
0x2226   :  { %2614 = vrcp.f32 %v1603_v39 }
0x2230   :  { %v2615_v40 = vpop.eup %2614 }
0x2231   :  { %v1610_v44 = vmul.f32 %v2615_v40, %v1608_v43 }
0x2294   :  { %v1613_v41 = vpop.permute.xlu1 %1612 }
0x2295   :  { %v1615_v42 = vmul.f32 %v2615_v40, %v1613_v41 }
0x2297   :  { %1617 = vrot.lane.b32.xlu0 %v1615_v42, %s2721_s25 }
0x2309   :  { %v1618_v45 = vpop.permute.xlu0 %1617 }
0x230a   :  { %v1620_v46 = vadd.f32 %v1618_v45, %v1610_v44  ;;  %v1948_v44 = vld [vmem:[%s3112_s7 + $0x8] sm:$0xff]  ;;  %v1949_v45 = vld [vmem:[%s3112_s7 + $0x10] sm:$0xff] }
0x230c   :  { %2616 = vtanh.f32 %v1620_v46 }
0x2316   :  { %v2617_v47 = vpop.eup %2616 }
0x2317   :  { %1623 = vrot.lane.b32.xlu1 %v2617_v47, %s2721_s25  ;;  %v1950_v47 = vld [vmem:[%s3112_s7 + $0x18] sm:$0xff] }
0x2389   :  { %v1624_v48 = vpop.permute.xlu1 %1623 }
0x238a   :  { %v1626_v49 = vmul.f32 %v2615_v40, %v1624_v48  ;;  %v2502_v48 = vpack.c.bf16 %v1950_v47, %v1949_v45 }
0x238c   :  { %1628 = vrot.lane.b32.xlu0 %v1626_v49, %s2722_s3 }
0x23fe   :  { %v1629_v50 = vpop.permute.xlu0 %1628 }
0x23ff   :  { %2355 = vmatmul.mubr.msk.f32.vlgmr.msra.gmra.mrb[14].mxu1 %vm156_vm2, %v1629_v50 }
0x2400   :  { %2494 = vmatpush3.bf16.msra.mxu1 %v2962_v60  ;;  %2376 = vmatprep.mubr.msk.f32.mxu1 %vm2719_vm0, %v2720_v1 }
0x2401   :  { %2495 = vmatprep.subr.bf16.mxu1 %v2718_v0 }
0x2404   :  { %2497 = vmatpush3.bf16.msra.mxu1 %v2971_v63  ;;  %v1714_v63 = vrot.slane %v1620_v46, 6 }
0x24d2   :  { %v1698_v51 = vpop.f32.mrb[14].mxu1 }
0x24d3   :  { %v1703_v15 = vrot.slane %v1698_v51, 6  ;;  %v2356_v52 = vpop.f32.mrb[15].mxu1 }
0x24d5   :  { %v1705_v53 = vadd.f32 %v1703_v15, %v2997_v11 }
0x24d7   :  { %2618 = vtanh.f32 %v1705_v53  ;;  %v2083_v55 = vmul.f32 -1.442695, %v1705_v53  ;;  %v2088_v53 = vld [vmem:[#allocation5] ss:$0 sm:$0xff] }
0x24d9   :  { %2620 = vpow2.f32 %v2083_v55 }
0x24e1   :  { %v2619_v54 = vpop.eup %2618 }
0x24e2   :  { %1718 = vrot.lane.b32.xlu1 %v2619_v54, %s2721_s25 }
0x24e3   :  { %v2621_v56 = vpop.eup %2620 }
0x24e4   :  { %v1709_v60 = vadd.f32 1.0, %v2621_v56 }
0x24e6   :  { %2622 = vrcp.f32 %v1709_v60 }
0x24f0   :  { %v2623_v37 = vpop.eup %2622 }
0x24f1   :  { %v1716_v59 = vmul.f32 %v2623_v37, %v1714_v63 }
0x2554   :  { %v1719_v57 = vpop.permute.xlu1 %1718 }
0x2555   :  { %v1721_v58 = vmul.f32 %v2623_v37, %v1719_v57 }
0x2557   :  { %1723 = vrot.lane.b32.xlu0 %v1721_v58, %s2721_s25 }
0x25c9   :  { %v1724_v61 = vpop.permute.xlu0 %1723 }
0x25ca   :  { %v1726_v62 = vadd.f32 %v1724_v61, %v1716_v59 }
0x25cc   :  { %2624 = vtanh.f32 %v1726_v62 }
0x25d6   :  { %v2625_v8 = vpop.eup %2624 }
0x25d7   :  { %1729 = vrot.lane.b32.xlu1 %v2625_v8, %s2721_s25 }
0x2649   :  { %v1730_v2 = vpop.permute.xlu1 %1729 }
0x264a   :  { %v1732_v3 = vmul.f32 %v2623_v37, %v1730_v2 }
0x264c   :  { %v1734_v4 = vrot.slane %v1732_v3, 2 }
0x264e   :  { %1735 = vrot.lane.b32.xlu0 %v1734_v4, %s2722_s3 }
0x26c0   :  { %v1736_v12 = vpop.permute.xlu0 %1735 }
0x26c1   :  { %2366 = vmatmul.mubr.msk.f32.vlgmr.msra.gmra.mrb[16].mxu0 %vm156_vm2, %v1736_v12 }
0x26c2   :  { %2387 = vmatprep.mubr.msk.f32.mxu0 %vm2719_vm0, %v2720_v1  ;;  %v1821_v1 = vrot.slane %v1726_v62, 6 }
0x2794   :  { %v1805_v5 = vpop.f32.mrb[16].mxu0 }
0x2795   :  { %v1810_v6 = vrot.slane %v1805_v5, 4  ;;  %v2367_v7 = vpop.f32.mrb[17].mxu0 }
0x2797   :  { %v1812_v9 = vadd.f32 %v1810_v6, %v2997_v11 }
0x2799   :  { %2626 = vtanh.f32 %v1812_v9  ;;  %v2085_v13 = vmul.f32 -1.442695, %v1812_v9 }
0x279b   :  { %2628 = vpow2.f32 %v2085_v13 }
0x27a3   :  { %v2627_v10 = vpop.eup %2626 }
0x27a4   :  { %1825 = vrot.lane.b32.xlu1 %v2627_v10, %s2721_s25 }
0x27a5   :  { %v2629_v16 = vpop.eup %2628 }
0x27a6   :  { %v1816_v18 = vadd.f32 1.0, %v2629_v16 }
0x27a8   :  { %2630 = vrcp.f32 %v1816_v18 }
0x27b2   :  { %v2631_v19 = vpop.eup %2630 }
0x27b3   :  { %v1823_v22 = vmul.f32 %v2631_v19, %v1821_v1 }
0x2816   :  { %v1826_v20 = vpop.permute.xlu1 %1825 }
0x2817   :  { %v1828_v21 = vmul.f32 %v2631_v19, %v1826_v20 }
0x2819   :  { %1830 = vrot.lane.b32.xlu0 %v1828_v21, %s2721_s25 }
0x288b   :  { %v1831_v23 = vpop.permute.xlu0 %1830 }
0x288c   :  { %v1833_v24 = vadd.f32 %v1831_v23, %v1823_v22 }
0x288e   :  { %2632 = vtanh.f32 %v1833_v24  ;;  %v1928_v40 = vrot.slane %v1833_v24, 6 }
0x2898   :  { %v2633_v25 = vpop.eup %2632 }
0x2899   :  { %1836 = vrot.lane.b32.xlu1 %v2633_v25, %s2721_s25 }
0x290b   :  { %v1837_v26 = vpop.permute.xlu1 %1836 }
0x290c   :  { %v1839_v27 = vmul.f32 %v2631_v19, %v1837_v26 }
0x290e   :  { %v1841_v28 = vrot.slane %v1839_v27, 4 }
0x2910   :  { %1842 = vrot.lane.b32.xlu0 %v1841_v28, %s2722_s3 }
0x2982   :  { %v1843_v14 = vpop.permute.xlu0 %1842 }
0x2983   :  { %2377 = vmatmul.mubr.msk.f32.vlgmr.msra.gmra.mrb[16].mxu1 %vm156_vm2, %v1843_v14 }
0x2a56   :  { %v1912_v29 = vpop.f32.mrb[16].mxu1 }
0x2a57   :  { %v1917_v30 = vrot.slane %v1912_v29, 2  ;;  %v2378_v31 = vpop.f32.mrb[17].mxu1 }
0x2a59   :  { %v1919_v32 = vadd.f32 %v1917_v30, %v2997_v11  ;;  %v1947_v11 = vld [vmem:[%s3112_s7] sm:$0xff]  ;;  %s2686_s7 = scalar_lea.vmem %s2043_s26, 32 }
0x2a5a   :  { %v2499_v46 = vpack.c.bf16 %v1948_v44, %v1947_v11  ;;  %p2687_p2 = scmp.ne.s32.totalorder %s2043_s26, %s2686_s7  ;;  %p2692_p4 = scmp.lt.s32.totalorder %s2686_s7, %s2686_s7 }
0x2a5b   :  { %2634 = vtanh.f32 %v1919_v32  ;;  %v2087_v17 = vmul.f32 -1.442695, %v1919_v32 }
0x2a5c   :  { %2500 = vmatpush3.bf16.msra.mxu0 %v2499_v46  ;;  %p2693_p5 = por %p2692_p4, %p2691_p3 }
0x2a5d   :  { %2636 = vpow2.f32 %v2087_v17  ;;  %2501 = vmatprep.subr.bf16.mxu0 %v2718_v0 }
0x2a5e   :  { %p2694_p6 = pnand %p2693_p5, %p2687_p2 }
0x2a60   :  { %2503 = vmatpush3.bf16.msra.mxu0 %v2502_v48 }
0x2a65   :  { %v2635_v33 = vpop.eup %2634 }
0x2a66   :  { %1932 = vrot.lane.b32.xlu1 %v2635_v33, %s2721_s25 }
0x2a67   :  { %v2637_v34 = vpop.eup %2636 }
0x2a68   :  { %v1923_v35 = vadd.f32 1.0, %v2637_v34 }
0x2a6a   :  { %2638 = vrcp.f32 %v1923_v35 }
0x2a74   :  { %v2639_v36 = vpop.eup %2638 }
0x2a75   :  { %v1930_v41 = vmul.f32 %v2639_v36, %v1928_v40 }
0x2ad8   :  { %v1933_v38 = vpop.permute.xlu1 %1932 }
0x2ad9   :  { %v1935_v39 = vmul.f32 %v2639_v36, %v1933_v38 }
0x2adb   :  { %1937 = vrot.lane.b32.xlu0 %v1935_v39, %s2721_s25 }
0x2b4d   :  { %v1938_v42 = vpop.permute.xlu0 %1937 }
0x2b4e   :  { %v1940_v43 = vadd.f32 %v1938_v42, %v1930_v41 }
0x2b50   :  { %2640 = vtanh.f32 %v1940_v43 }
0x2b5a   :  { %v2641_v49 = vpop.eup %2640 }
0x2b5b   :  { %1943 = vrot.lane.b32.xlu1 %v2641_v49, %s2721_s25 }
0x2bcd   :  { %v1944_v50 = vpop.permute.xlu1 %1943 }
0x2bce   :  { %v1946_v51 = vmul.f32 %v2639_v36, %v1944_v50 }
0x2bd0   :  { %v1959_v15 = vrot.slane %v1946_v51, 6 }
0x2bd2   :  { %1960 = vrot.lane.b32.xlu0 %v1959_v15, %s2722_s3 }
0x2c44   :  { %v1961_v52 = vpop.permute.xlu0 %1960 }
0x2c45   :  { %2388 = vmatmul.mubr.msk.f32.vlgmr.msra.gmra.mrb[18].mxu0 %vm156_vm2, %v1961_v52 }
0x2d18   :  { %v2030_v54 = vpop.f32.mrb[18].mxu0 }
0x2d19   :  { %v2031_v55 = vadd.f32 %v2088_v53, %v2030_v54  ;;  %v2389_v56 = vpop.f32.mrb[19].mxu0 }
0x2d1b   :  { %2035 = vst.msk [vmem:[#allocation7] sm:$0x3] %vm2034_vm6, %v2031_v55 }
0x2d1c   :  { %2697 = shalt.err (!%p2694_p6)
}
0x2d1d   :  { %s2698_s27 = scalar_lea.hbm %s3114_s9, 32 }
0x2d1e   :  { %p2699_p7 = scmp.ne.s32.totalorder %s3114_s9, %s2698_s27  ;;  %p2702_p8 = scmp.lt.u32.totalorder %s2698_s27, %s3114_s9 }
0x2d20   :  { %p2704_p9 = pnand %p2702_p8, %p2699_p7 }
0x2d22   :  { %2707 = shalt.err (!%p2704_p9)
}
0x2d23   :  { %2045 = dma.vmem_to_hbm [thread:$0]  %s2043_s26, 32, %s3114_s9, [#allocation4]  }
0x2d24   :  { %2712 = dma.done.wait [#allocation4], 32  }
0x2d25   :  { %2713 = vsyncadd [#allocation4], 4294967264 }
0x2d26   :  { %2049 = vsyncpa [#allocation3], 1 }
0x2d27   :  { %2050 = vsyncpa [#allocation6], 1 }
0x2d28   :  { %2051 = vsyncpa [#allocation4], 1 }

</bundles_post_ra>
